<compile_context>
chip_gen: v7x
topology: tpu7x:2x2x1
jax: 0.10.0
libtpu: 0.0.40
codegen_flags: <defaults>
</compile_context>

<pallas_src>
import functools

import jax
import jax.numpy as jnp
from jax.experimental import pallas as pl
from jax.experimental.pallas import tpu as pltpu

LANE = 128


def _round_up(n, m):
    return ((n + m - 1) // m) * m


def _pick_tb(B, N, max_rows=256):
    """Batch-tile size.

    Cap the per-tile matmul M dim (tb*N) at ~max_rows so the f32 LN/tanh
    epilogue stays inside the 64-vreg file (no spill traffic on the vld/vst
    slots), but split one fat tile into >= 2 parallel tiles whenever each half
    still has >= 128 rows so both v7x TensorCores get work.
    """
    tb = max(1, min(B, max_rows // max(N, 1)))
    if tb >= B and B * N >= 2 * 128:
        tb = -(-B // 2)          # ceil(B / 2) -> two parallel tiles
    return tb


def _layer_norm_tanh(y, gamma, beta, inv_c, eps):
    # Padded lanes of y are exactly 0 (zero-padded W / b), so plain lane sums
    # are exact over the real feature width; no iota/where mask needed.
    mean = jnp.sum(y, axis=-1, keepdims=True) * inv_c
    var = jnp.sum(y * y, axis=-1, keepdims=True) * inv_c - mean * mean
    y = (y - mean) * jax.lax.rsqrt(var + eps)
    # Padded lanes of gamma/beta are 0 -> padded lanes return to exactly 0.
    return jnp.tanh(y * gamma + beta)


def _encode_obb_kernel(x_ref, *refs, num_layers, real_out_dims, eps, matmul_dtype):
    """Fused MLP stack + max-over-corners for one batch tile.

    refs = (w0, b0, g0, be0, w1, b1, g1, be1, ..., o_ref)
    x_ref: (tb, N, 3) f32 at its natural feature width.
    """
    o_ref = refs[-1]
    p_refs = refs[:-1]

    tb, n_corners, d_in = x_ref.shape
    m = tb * n_corners

    # ---- Layer 0: K == 3, so skip the MXU; three f32 broadcast-FMAs on the VPU.
    w0_ref, b0_ref, g0_ref, be0_ref = p_refs[0:4]
    x = x_ref[...]                                   # (tb, N, 3) f32
    w0 = w0_ref[...]                                 # (3, C0p)  f32
    y = b0_ref[...]                                  # (1, C0p) -> broadcasts up
    for k in range(d_in):
        y = y + x[:, :, k:k + 1] * w0[k:k + 1, :]    # (tb, N, C0p)
    h = _layer_norm_tanh(y, g0_ref[...], be0_ref[...],
                         1.0 / real_out_dims[0], eps)
    h = h.reshape(m, h.shape[-1])                    # fold corners into matmul M
    # Dropout(p=0.2): identity in eval mode.

    # ---- Layers 1..L-1: bf16 MXU matmuls, f32 accumulation, f32 epilogue.
    for l in range(1, num_layers):
        w_ref, b_ref, g_ref, be_ref = p_refs[4 * l:4 * l + 4]
        y = jnp.dot(h.astype(matmul_dtype), w_ref[...],
                    preferred_element_type=jnp.float32) + b_ref[...]
        h = _layer_norm_tanh(y, g_ref[...], be_ref[...],
                             1.0 / real_out_dims[l], eps)

    # torch.max(corners_features, dim=-2).values
    h = h.reshape(tb, n_corners, h.shape[-1])
    o_ref[...] = jnp.max(h, axis=1).astype(o_ref.dtype)


def init_mlp_params(key, input_size, channels):
    """Mirror the torch module's parameter init (xavier_normal_ on Linear weights)."""
    params = []
    d_in = input_size
    for d_out in channels:
        key, kw, kb = jax.random.split(key, 3)
        std = (2.0 / (d_in + d_out)) ** 0.5                 # nn.init.xavier_normal_
        w = std * jax.random.normal(kw, (d_in, d_out), dtype=jnp.float32)
        bound = 1.0 / (d_in ** 0.5)                         # torch Linear bias default
        b = jax.random.uniform(kb, (d_out,), minval=-bound, maxval=bound,
                               dtype=jnp.float32)
        gamma = jnp.ones((d_out,), jnp.float32)             # LayerNorm weight
        beta = jnp.zeros((d_out,), jnp.float32)             # LayerNorm bias
        params.append((w, b, gamma, beta))
        d_in = d_out
    return params


def encode_obb_forward(corners, params, *, tb=None, matmul_dtype=jnp.bfloat16,
                       eps=1e-5):
    """corners: (B, N, 3) -> (B, channels[-1]); single fused pallas_call."""
    B, N, d_in = corners.shape
    if tb is None:
        tb = _pick_tb(B, N)
    b_pad = _round_up(B, tb)

    x = corners.astype(jnp.float32)
    if b_pad != B:
        x = jnp.pad(x, ((0, b_pad - B), (0, 0), (0, 0)))

    # Input keeps its natural feature width: block last dims equal the full
    # array dims, so the BlockSpec is legal without lane padding.
    flat_inputs = [x]
    in_specs = [pl.BlockSpec((tb, N, d_in), lambda i: (i, 0, 0))]

    real_out_dims = []
    d_prev, d_prev_p = d_in, d_in
    for l, (w, b, g, be) in enumerate(params):
        c = w.shape[1]
        cp = _round_up(c, LANE)
        # Layer 0 runs on the VPU in f32; later weights are stored bf16 for the MXU.
        w_dtype = jnp.float32 if l == 0 else matmul_dtype
        wp = jnp.zeros((d_prev_p, cp), w_dtype).at[:d_prev, :c].set(w.astype(w_dtype))

        def pad_vec(v, c=c, cp=cp):
            return jnp.zeros((1, cp), jnp.float32).at[0, :c].set(v.astype(jnp.float32))

        flat_inputs += [wp, pad_vec(b), pad_vec(g), pad_vec(be)]
        in_specs += [
            pl.BlockSpec((d_prev_p, cp), lambda i: (0, 0)),   # VMEM-resident weights
            pl.BlockSpec((1, cp), lambda i: (0, 0)),
            pl.BlockSpec((1, cp), lambda i: (0, 0)),
            pl.BlockSpec((1, cp), lambda i: (0, 0)),
        ]
        real_out_dims.append(c)
        d_prev, d_prev_p = c, cp

    kernel = functools.partial(
        _encode_obb_kernel, num_layers=len(params),
        real_out_dims=tuple(real_out_dims), eps=eps, matmul_dtype=matmul_dtype)

    out_padded = pl.pallas_call(
        kernel,
        out_shape=jax.ShapeDtypeStruct((b_pad, d_prev_p), jnp.float32),
        grid=(b_pad // tb,),
        in_specs=in_specs,
        out_specs=pl.BlockSpec((tb, d_prev_p), lambda i: (i, 0)),
        compiler_params=pltpu.CompilerParams(dimension_semantics=("parallel",)),
    )(*flat_inputs)

    # Strip batch / lane padding (layout plumbing only).
    return out_padded[:B, :real_out_dims[-1]]


def _encode_obb_reference(corners, params, eps=1e-5):
    """Pure-JAX f32 reference mirroring the torch forward."""
    h = corners.astype(jnp.float32)
    for (w, b, g, be) in params:
        y = h @ w + b
        mean = jnp.mean(y, axis=-1, keepdims=True)
        var = jnp.mean((y - mean) ** 2, axis=-1, keepdims=True)
        y = (y - mean) / jnp.sqrt(var + eps)
        y = y * g + be
        h = jnp.tanh(y)
    return jnp.max(h, axis=-2)


if __name__ == "__main__":
    key = jax.random.PRNGKey(0)
    k_in, k_par = jax.random.split(key)

    batch, num_corners, input_size = 32, 8, 3   # Encode_Obb: MLP(input_size=3)
    channels = (64, 32)

    corners = jax.random.normal(k_in, (batch, num_corners, input_size),
                                dtype=jnp.float32)
    params = init_mlp_params(k_par, input_size, channels)

    out = encode_obb_forward(corners, params)
    out = jax.block_until_ready(out)
    assert out.shape == (batch, channels[-1])

    # Sanity check against the f32 reference (layer 0 is f32; only layer-1
    # matmul uses bf16 operands, so the tolerance is comfortably met).
    ref = _encode_obb_reference(corners, params)
    max_err = float(jnp.max(jnp.abs(out - ref)))
    assert max_err < 5e-2, f"mismatch vs reference: {max_err}"

    print("KERNEL_OK")
</pallas_src>

<mosaic_0001>
module attributes {stable_mosaic.version = 11 : i64} {
  func.func @_encode_obb_kernel(%arg0: i32, %arg1: memref<16x8x3xf32, #tpu.memory_space<vmem>>, %arg2: memref<3x128xf32, #tpu.memory_space<vmem>>, %arg3: memref<1x128xf32, #tpu.memory_space<vmem>>, %arg4: memref<1x128xf32, #tpu.memory_space<vmem>>, %arg5: memref<1x128xf32, #tpu.memory_space<vmem>>, %arg6: memref<128x128xbf16, #tpu.memory_space<vmem>>, %arg7: memref<1x128xf32, #tpu.memory_space<vmem>>, %arg8: memref<1x128xf32, #tpu.memory_space<vmem>>, %arg9: memref<1x128xf32, #tpu.memory_space<vmem>>, %arg10: memref<16x128xf32, #tpu.memory_space<vmem>>) attributes {dimension_semantics = [#tpu.dimension_semantics<parallel>], iteration_bounds = array<i64: 2>, scalar_prefetch = 0 : i64, scratch_operands = 0 : i64, tpu.core_type = #tpu.core_type<tc>, window_params = [{transform_indices = @transform_0, window_bounds = array<i64: 16, 8, 3>}, {pipeline_mode = #tpu.pipeline_mode<synchronous>, transform_indices = @transform_1, window_bounds = array<i64: 3, 128>}, {pipeline_mode = #tpu.pipeline_mode<synchronous>, transform_indices = @transform_2, window_bounds = array<i64: 1, 128>}, {pipeline_mode = #tpu.pipeline_mode<synchronous>, transform_indices = @transform_3, window_bounds = array<i64: 1, 128>}, {pipeline_mode = #tpu.pipeline_mode<synchronous>, transform_indices = @transform_4, window_bounds = array<i64: 1, 128>}, {pipeline_mode = #tpu.pipeline_mode<synchronous>, transform_indices = @transform_5, window_bounds = array<i64: 128, 128>}, {pipeline_mode = #tpu.pipeline_mode<synchronous>, transform_indices = @transform_6, window_bounds = array<i64: 1, 128>}, {pipeline_mode = #tpu.pipeline_mode<synchronous>, transform_indices = @transform_7, window_bounds = array<i64: 1, 128>}, {pipeline_mode = #tpu.pipeline_mode<synchronous>, transform_indices = @transform_8, window_bounds = array<i64: 1, 128>}, {transform_indices = @transform_9, window_bounds = array<i64: 16, 128>}]} {
    %c0 = arith.constant 0 : index
    %c0_0 = arith.constant 0 : index
    %c0_1 = arith.constant 0 : index
    %0 = vector.load %arg1[%c0, %c0_0, %c0_1] : memref<16x8x3xf32, #tpu.memory_space<vmem>>, vector<16x8x3xf32>
    %c0_2 = arith.constant 0 : index
    %c0_3 = arith.constant 0 : index
    %1 = vector.load %arg2[%c0_2, %c0_3] : memref<3x128xf32, #tpu.memory_space<vmem>>, vector<3x128xf32>
    %c0_4 = arith.constant 0 : index
    %c0_5 = arith.constant 0 : index
    %2 = vector.load %arg3[%c0_4, %c0_5] : memref<1x128xf32, #tpu.memory_space<vmem>>, vector<1x128xf32>
    %3 = vector.extract_strided_slice %0 {offsets = [0, 0, 0], sizes = [16, 8, 1], strides = [1, 1, 1]} : vector<16x8x3xf32> to vector<16x8x1xf32>
    %4 = vector.extract_strided_slice %1 {offsets = [0, 0], sizes = [1, 128], strides = [1, 1]} : vector<3x128xf32> to vector<1x128xf32>
    %5 = vector.shape_cast %4 : vector<1x128xf32> to vector<1x1x128xf32>
    %6 = vector.broadcast %3 : vector<16x8x1xf32> to vector<16x8x128xf32>
    %7 = vector.broadcast %5 : vector<1x1x128xf32> to vector<16x8x128xf32>
    %8 = arith.mulf %6, %7 : vector<16x8x128xf32>
    %9 = vector.shape_cast %2 : vector<1x128xf32> to vector<1x1x128xf32>
    %10 = vector.broadcast %9 : vector<1x1x128xf32> to vector<16x8x128xf32>
    %11 = arith.addf %10, %8 : vector<16x8x128xf32>
    %12 = vector.extract_strided_slice %0 {offsets = [0, 0, 1], sizes = [16, 8, 1], strides = [1, 1, 1]} : vector<16x8x3xf32> to vector<16x8x1xf32>
    %13 = vector.extract_strided_slice %1 {offsets = [1, 0], sizes = [1, 128], strides = [1, 1]} : vector<3x128xf32> to vector<1x128xf32>
    %14 = vector.shape_cast %13 : vector<1x128xf32> to vector<1x1x128xf32>
    %15 = vector.broadcast %12 : vector<16x8x1xf32> to vector<16x8x128xf32>
    %16 = vector.broadcast %14 : vector<1x1x128xf32> to vector<16x8x128xf32>
    %17 = arith.mulf %15, %16 : vector<16x8x128xf32>
    %18 = arith.addf %11, %17 : vector<16x8x128xf32>
    %19 = vector.extract_strided_slice %0 {offsets = [0, 0, 2], sizes = [16, 8, 1], strides = [1, 1, 1]} : vector<16x8x3xf32> to vector<16x8x1xf32>
    %20 = vector.extract_strided_slice %1 {offsets = [2, 0], sizes = [1, 128], strides = [1, 1]} : vector<3x128xf32> to vector<1x128xf32>
    %21 = vector.shape_cast %20 : vector<1x128xf32> to vector<1x1x128xf32>
    %22 = vector.broadcast %19 : vector<16x8x1xf32> to vector<16x8x128xf32>
    %23 = vector.broadcast %21 : vector<1x1x128xf32> to vector<16x8x128xf32>
    %24 = arith.mulf %22, %23 : vector<16x8x128xf32>
    %25 = arith.addf %18, %24 : vector<16x8x128xf32>
    %c0_6 = arith.constant 0 : index
    %c0_7 = arith.constant 0 : index
    %26 = vector.load %arg4[%c0_6, %c0_7] : memref<1x128xf32, #tpu.memory_space<vmem>>, vector<1x128xf32>
    %c0_8 = arith.constant 0 : index
    %c0_9 = arith.constant 0 : index
    %27 = vector.load %arg5[%c0_8, %c0_9] : memref<1x128xf32, #tpu.memory_space<vmem>>, vector<1x128xf32>
    %cst = arith.constant dense<0.000000e+00> : vector<16x8xf32>
    %28 = vector.multi_reduction <add>, %25, %cst [2] : vector<16x8x128xf32> to vector<16x8xf32>
    %29 = vector.shape_cast %28 : vector<16x8xf32> to vector<16x8x1xf32>
    %cst_10 = arith.constant 1.562500e-02 : f32
    %30 = vector.broadcast %cst_10 : f32 to vector<16x8x1xf32>
    %31 = arith.mulf %29, %30 : vector<16x8x1xf32>
    %32 = arith.mulf %25, %25 : vector<16x8x128xf32>
    %cst_11 = arith.constant dense<0.000000e+00> : vector<16x8xf32>
    %33 = vector.multi_reduction <add>, %32, %cst_11 [2] : vector<16x8x128xf32> to vector<16x8xf32>
    %34 = vector.shape_cast %33 : vector<16x8xf32> to vector<16x8x1xf32>
    %cst_12 = arith.constant 1.562500e-02 : f32
    %35 = vector.broadcast %cst_12 : f32 to vector<16x8x1xf32>
    %36 = arith.mulf %34, %35 : vector<16x8x1xf32>
    %37 = arith.mulf %31, %31 : vector<16x8x1xf32>
    %38 = arith.subf %36, %37 : vector<16x8x1xf32>
    %39 = vector.broadcast %31 : vector<16x8x1xf32> to vector<16x8x128xf32>
    %40 = arith.subf %25, %39 : vector<16x8x128xf32>
    %cst_13 = arith.constant 9.99999974E-6 : f32
    %41 = vector.broadcast %cst_13 : f32 to vector<16x8x1xf32>
    %42 = arith.addf %38, %41 : vector<16x8x1xf32>
    %43 = math.rsqrt %42 : vector<16x8x1xf32>
    %44 = vector.broadcast %43 : vector<16x8x1xf32> to vector<16x8x128xf32>
    %45 = arith.mulf %40, %44 : vector<16x8x128xf32>
    %46 = vector.shape_cast %26 : vector<1x128xf32> to vector<1x1x128xf32>
    %47 = vector.broadcast %46 : vector<1x1x128xf32> to vector<16x8x128xf32>
    %48 = arith.mulf %45, %47 : vector<16x8x128xf32>
    %49 = vector.shape_cast %27 : vector<1x128xf32> to vector<1x1x128xf32>
    %50 = vector.broadcast %49 : vector<1x1x128xf32> to vector<16x8x128xf32>
    %51 = arith.addf %48, %50 : vector<16x8x128xf32>
    %52 = math.tanh %51 : vector<16x8x128xf32>
    %53 = vector.shape_cast %52 : vector<16x8x128xf32> to vector<128x128xf32>
    %54 = arith.truncf %53 : vector<128x128xf32> to vector<128x128xbf16>
    %c0_14 = arith.constant 0 : index
    %c0_15 = arith.constant 0 : index
    %55 = vector.load %arg6[%c0_14, %c0_15] : memref<128x128xbf16, #tpu.memory_space<vmem>>, vector<128x128xbf16>
    %cst_16 = arith.constant dense<0.000000e+00> : vector<128x128xf32>
    %56 = tpu.matmul %54, %55, %cst_16 {dimension_numbers = #tpu.dot_dimension_numbers<[1], [0], [0], [1], [0, 0, 1, 1], [], []>} : vector<128x128xbf16>, vector<128x128xbf16>, vector<128x128xf32> -> vector<128x128xf32>
    %c0_17 = arith.constant 0 : index
    %c0_18 = arith.constant 0 : index
    %57 = vector.load %arg7[%c0_17, %c0_18] : memref<1x128xf32, #tpu.memory_space<vmem>>, vector<1x128xf32>
    %58 = vector.broadcast %57 : vector<1x128xf32> to vector<128x128xf32>
    %59 = arith.addf %56, %58 : vector<128x128xf32>
    %c0_19 = arith.constant 0 : index
    %c0_20 = arith.constant 0 : index
    %60 = vector.load %arg8[%c0_19, %c0_20] : memref<1x128xf32, #tpu.memory_space<vmem>>, vector<1x128xf32>
    %c0_21 = arith.constant 0 : index
    %c0_22 = arith.constant 0 : index
    %61 = vector.load %arg9[%c0_21, %c0_22] : memref<1x128xf32, #tpu.memory_space<vmem>>, vector<1x128xf32>
    %cst_23 = arith.constant dense<0.000000e+00> : vector<128xf32>
    %62 = vector.multi_reduction <add>, %59, %cst_23 [1] : vector<128x128xf32> to vector<128xf32>
    %63 = vector.shape_cast %62 : vector<128xf32> to vector<128x1xf32>
    %cst_24 = arith.constant 3.125000e-02 : f32
    %64 = vector.broadcast %cst_24 : f32 to vector<128x1xf32>
    %65 = arith.mulf %63, %64 : vector<128x1xf32>
    %66 = arith.mulf %59, %59 : vector<128x128xf32>
    %cst_25 = arith.constant dense<0.000000e+00> : vector<128xf32>
    %67 = vector.multi_reduction <add>, %66, %cst_25 [1] : vector<128x128xf32> to vector<128xf32>
    %68 = vector.shape_cast %67 : vector<128xf32> to vector<128x1xf32>
    %cst_26 = arith.constant 3.125000e-02 : f32
    %69 = vector.broadcast %cst_26 : f32 to vector<128x1xf32>
    %70 = arith.mulf %68, %69 : vector<128x1xf32>
    %71 = arith.mulf %65, %65 : vector<128x1xf32>
    %72 = arith.subf %70, %71 : vector<128x1xf32>
    %73 = vector.broadcast %65 : vector<128x1xf32> to vector<128x128xf32>
    %74 = arith.subf %59, %73 : vector<128x128xf32>
    %cst_27 = arith.constant 9.99999974E-6 : f32
    %75 = vector.broadcast %cst_27 : f32 to vector<128x1xf32>
    %76 = arith.addf %72, %75 : vector<128x1xf32>
    %77 = math.rsqrt %76 : vector<128x1xf32>
    %78 = vector.broadcast %77 : vector<128x1xf32> to vector<128x128xf32>
    %79 = arith.mulf %74, %78 : vector<128x128xf32>
    %80 = vector.broadcast %60 : vector<1x128xf32> to vector<128x128xf32>
    %81 = arith.mulf %79, %80 : vector<128x128xf32>
    %82 = vector.broadcast %61 : vector<1x128xf32> to vector<128x128xf32>
    %83 = arith.addf %81, %82 : vector<128x128xf32>
    %84 = math.tanh %83 : vector<128x128xf32>
    %85 = vector.shape_cast %84 : vector<128x128xf32> to vector<16x8x128xf32>
    %cst_28 = arith.constant dense<0xFF800000> : vector<16x128xf32>
    %86 = vector.multi_reduction <maximumf>, %85, %cst_28 [1] : vector<16x8x128xf32> to vector<16x128xf32>
    %c0_29 = arith.constant 0 : index
    %c0_30 = arith.constant 0 : index
    %87 = vector.load %arg10[%c0_29, %c0_30] : memref<16x128xf32, #tpu.memory_space<vmem>>, vector<16x128xf32>
    tpu.vector_store %arg10[%c0_29, %c0_30], %86 {strides = array<i32>} : memref<16x128xf32, #tpu.memory_space<vmem>>, vector<16x128xf32>,
    return
  }
  func.func @transform_0(%arg0: i32) -> (i32, i32, i32) {
    %c0_i32 = arith.constant 0 : i32
    %c0_i32_0 = arith.constant 0 : i32
    %c0_i32_1 = arith.constant 0 : i32
    return %arg0, %c0_i32, %c0_i32_0 : i32, i32, i32
  }
  func.func @transform_1(%arg0: i32) -> (i32, i32) {
    %c0_i32 = arith.constant 0 : i32
    %c0_i32_0 = arith.constant 0 : i32
    %c0_i32_1 = arith.constant 0 : i32
    return %c0_i32, %c0_i32_0 : i32, i32
  }
  func.func @transform_2(%arg0: i32) -> (i32, i32) {
    %c0_i32 = arith.constant 0 : i32
    %c0_i32_0 = arith.constant 0 : i32
    %c0_i32_1 = arith.constant 0 : i32
    return %c0_i32, %c0_i32_0 : i32, i32
  }
  func.func @transform_3(%arg0: i32) -> (i32, i32) {
    %c0_i32 = arith.constant 0 : i32
    %c0_i32_0 = arith.constant 0 : i32
    %c0_i32_1 = arith.constant 0 : i32
    return %c0_i32, %c0_i32_0 : i32, i32
  }
  func.func @transform_4(%arg0: i32) -> (i32, i32) {
    %c0_i32 = arith.constant 0 : i32
    %c0_i32_0 = arith.constant 0 : i32
    %c0_i32_1 = arith.constant 0 : i32
    return %c0_i32, %c0_i32_0 : i32, i32
  }
  func.func @transform_5(%arg0: i32) -> (i32, i32) {
    %c0_i32 = arith.constant 0 : i32
    %c0_i32_0 = arith.constant 0 : i32
    %c0_i32_1 = arith.constant 0 : i32
    return %c0_i32, %c0_i32_0 : i32, i32
  }
  func.func @transform_6(%arg0: i32) -> (i32, i32) {
    %c0_i32 = arith.constant 0 : i32
    %c0_i32_0 = arith.constant 0 : i32
    %c0_i32_1 = arith.constant 0 : i32
    return %c0_i32, %c0_i32_0 : i32, i32
  }
  func.func @transform_7(%arg0: i32) -> (i32, i32) {
    %c0_i32 = arith.constant 0 : i32
    %c0_i32_0 = arith.constant 0 : i32
    %c0_i32_1 = arith.constant 0 : i32
    return %c0_i32, %c0_i32_0 : i32, i32
  }
  func.func @transform_8(%arg0: i32) -> (i32, i32) {
    %c0_i32 = arith.constant 0 : i32
    %c0_i32_0 = arith.constant 0 : i32
    %c0_i32_1 = arith.constant 0 : i32
    return %c0_i32, %c0_i32_0 : i32, i32
  }
  func.func @transform_9(%arg0: i32) -> (i32, i32) {
    %c0_i32 = arith.constant 0 : i32
    %c0_i32_0 = arith.constant 0 : i32
    return %arg0, %c0_i32 : i32, i32
  }
}

</mosaic_0001>

<bundles_post_ra>
// kernel: tpu_custom_call.1
= control target key start
LH: loop header
LB: loop body
LE: loop exit
PB: predicated region body
PF: predicated region fallthrough
CT: control target
= control target key end

     0   :  { %14 = vsyncpa [#allocation3], 0  ;;  %s2716_s0 = inlined_call_operand.vmem [shape: f32[32,8,3], index: 0, kind: input, shape index: {}]   ;;  %s2717_s1 = inlined_call_operand.vmem [shape: f32[3,128], index: 1, kind: input, shape index: {}]   ;;  %s2718_s2 = inlined_call_operand.vmem [shape: f32[1,128], index: 2, kind: input, shape index: {}]   ;;  %s2719_s3 = inlined_call_operand.vmem [shape: f32[1,128], index: 3, kind: input, shape index: {}]   ;;  %s2720_s4 = inlined_call_operand.vmem [shape: f32[1,128], index: 4, kind: input, shape index: {}]   ;;  %s2721_s5 = inlined_call_operand.vmem [shape: bf16[128,128], index: 5, kind: input, shape index: {}]   ;;  %s2722_s6 = inlined_call_operand.vmem [shape: f32[1,128], index: 6, kind: input, shape index: {}]   ;;  %s2723_s7 = inlined_call_operand.vmem [shape: f32[1,128], index: 7, kind: input, shape index: {}]   ;;  %s2724_s8 = inlined_call_operand.vmem [shape: f32[1,128], index: 8, kind: input, shape index: {}]   ;;  %s2725_s9 = inlined_call_operand.hbm [shape: f32[32,128], index: 9, kind: output, shape index: {}]  }
   0x1   :  { %16 = vsyncpa [#allocation3 + $0x1], 0  ;;  %s2004_s30 = smov 0   ;;  %s2006_s10 = smov 0  }
   0x2   :  { %s2008_s11 = smov 0   ;;  %s2010_s12 = smov 0  }
   0x3 LB: > { %s2025_s13 = sadd.s32 4294967295, %s1946_s12   ;;  %s1604_s14 = sadd.s32 4294967294, %s1946_s12   ;;  %s1946_s12 = sphi %s2010_s12, %s2731_s12   ;;  %s1942_s11 = sphi %s2008_s11, %s2730_s11   ;;  %s1938_s10 = sphi %s2006_s10, %s2729_s10   ;;  %s1934_s30 = sphi %s2004_s30, %s2728_s30  }
   0x4   : > { %s2029_s15 = sadd.s32 1, %s1946_s12   ;;  %s223_s16 = sadd.s32 1, %s1942_s11 }
   0x5   : > { %s220_s17 = ssub.s32 %s1946_s12, %s2029_s15  ;;  %p233_p0 = scmp.ne.s32.totalorder %s1942_s11, %s1938_s10 }
   0x6   : > { %p221_p1 = scmp.eq.s32.totalorder %s220_s17, 0  ;;  %p234_p2 = scmp.eq.s32.totalorder %s2025_s13, 1 }
   0x7   : > { %p239_p3 = scmp.ne.s32.totalorder %s1938_s10, %s1934_s30  ;;  %p240_p4 = scmp.eq.s32.totalorder %s1604_s14, 1 }
   0x8   : > { %s2040_s18 = scalar_select %p221_p1, %s1942_s11, %s223_s16  }
   0x9   : > { %p2042_p5 = por %p234_p2, %p233_p0  ;;  %p2046_p6 = por %p240_p4, %p239_p3 }
   0xa   : > { %p1607_p7 = scmp.ge.s32.totalorder %s1946_s12, 1  ;;  %p291_p8 = scmp.lt.s32.totalorder %s1946_s12, 3 }
   0xc   : > { %p292_p9 = pnand %p1607_p7, %p291_p8 }
   0xd   : > { %s1609_s21 = sshll.u32 (!%p292_p9), %s2025_s13, 4  ;;  %v1948_v0 = vmov (!%p292_p9), 0   ;;  %v1949_v10 = vmov (!%p292_p9), 1   ;;  %v1950_v14 = vmov (!%p292_p9), 2   ;;  %v433_v27 = vlaneseq (!%p292_p9)  ;;  %v351_v34 = vld [vmem:[%s2717_s1] sm:$0x7] (!%p292_p9) }
   0xe   : > { %295 = sbr.rel (%p292_p9) target bundleno = 904 (0x388), region = 56  ;;  %1740 = vset.pattern.permute.xlu1 (!%p292_p9), %v1948_v0  ;;  %1739 = vset.pattern.permute.xlu0 (!%p292_p9), %v1948_v0  ;;  %p328_p10 = scmp.lt.s32.totalorder (!%p292_p9), %s1609_s21, 31  ;;  %v2103_v43 = vld [vmem:[%s2718_s2] ss:$0 sm:$0xff] (!%p292_p9)  ;;  %vm1503_vm0 = vcmask (!%p292_p9), 1041409   ;;  %vm1505_vm1 = vcmask (!%p292_p9), 1042434  }
   0xf   : > { %v434_v30 = vshrl.u32 (!%p292_p9), %v433_v27, 7  ;;  %vm1507_vm2 = vcmask (!%p292_p9), 1043459   ;;  %vm1509_vm3 = vcmask (!%p292_p9), 1044484   ;;  %vm1511_vm4 = vcmask (!%p292_p9), 1045509   ;;  %s324_s17 = sand.u32 (!%p292_p9), 1, %s1938_s10   ;;  %s1951_s29 = smov (!%p292_p9), [#allocation2]  }
  0x10   : > { %vm1513_vm5 = vcmask (!%p292_p9), 1046534   ;;  %vm1515_vm6 = vcmask (!%p292_p9), 1047559   ;;  %s1888_s14 = sshll.u32 (!%p292_p9), %s1951_s29, 4  ;;  %s1889_s14 = int_to_ptr.vmem [resolvable:$false] %s1888_s14 }
  0x11   : > { %v435_v33 = vsub.s32 (!%p292_p9), 0, %v434_v30  ;;  %v641_v38 = vsub.s32 (!%p292_p9), 2, %v434_v30  ;;  %v541_v39 = vsub.s32 (!%p292_p9), 1, %v434_v30  ;;  %s1890_s16 = scalar_lea.vmem (!%p292_p9), %s1889_s14, 512 }
  0x13   : > { %v2093_v37 = vrot.slane (!%p292_p9), %v351_v34, %v435_v33  ;;  %v2105_v44 = vrot.slane (!%p292_p9), %v351_v34, %v641_v38  ;;  %v2107_v45 = vrot.slane (!%p292_p9), %v351_v34, %v541_v39 }
  0x15   : > { %s2733_s21 = smov (!%p328_p10, %s1609_s21), 31 }
  0x16   : > { %s1610_s22 = sshll.u32 %s2733_s21, 3  ;;  %s1608_s21 = sshll.u32 %s324_s17, 4 }
  0x17   : > { %s2056_s25 = scalar_lea.vmem %s2716_s0, %s1610_s22  ;;  %s1630_s22 = sshll.u32 %s2025_s13, 8 }
  0x18   : > { %v343_v1 = vld [vmem:[%s2056_s25 + $0x40] sm:$0xff]  ;;  %v344_v3 = vld [vmem:[%s2056_s25 + $0x48] sm:$0xff]  ;;  %v338_v5 = vld [vmem:[%s2056_s25 + $0x18] sm:$0xff]  ;;  %s326_s23 = scalar_lea.vmem [#allocation2], %s1608_s21  ;;  %s2667_s27 = scalar_lea.hbm %s2725_s9, %s1630_s22 }
  0x19   : > { %v335_v2 = vld [vmem:[%s2056_s25] sm:$0xff]  ;;  %395 = vperm.xlu1 %1740, %v343_v1   ;;  %v336_v4 = vld [vmem:[%s2056_s25 + $0x8] sm:$0xff]  ;;  %v337_v6 = vld [vmem:[%s2056_s25 + $0x10] sm:$0xff]  ;;  %s1542_s24 = sshll.u32 %s326_s23, 4  ;;  %s2675_s13 = scalar_lea.sflag [#allocation3], %s324_s17  ;;  %s2669_s24 = int_to_ptr.vmem [resolvable:$true] %s1542_s24 }
  0x1a   : > { %355 = vperm.xlu0 %1739, %v335_v2   ;;  %v346_v7 = vld [vmem:[%s2056_s25 + $0x58] sm:$0xff]  ;;  %v345_v8 = vld [vmem:[%s2056_s25 + $0x50] sm:$0xff]  ;;  %v339_v9 = vld [vmem:[%s2056_s25 + $0x20] sm:$0xff]  ;;  %s1884_s28 = scalar_lea.vmem %s2669_s24, 256  ;;  %p1891_p0 = scmp.lt.s32.totalorder %s2669_s24, %s1889_s14 }
  0x1b   : > { %v348_v11 = vld [vmem:[%s2056_s25 + $0x68] sm:$0xff]  ;;  %v342_v12 = vld [vmem:[%s2056_s25 + $0x38] sm:$0xff]  ;;  %v341_v16 = vld [vmem:[%s2056_s25 + $0x30] sm:$0xff]  ;;  %p1885_p11 = scmp.ne.s32.totalorder %s2669_s24, %s1884_s28  ;;  %p1892_p1 = scmp.lt.s32.totalorder %s1890_s16, %s1884_s28 }
  0x1c   : > { %v350_v13 = vld [vmem:[%s2056_s25 + $0x78] sm:$0xff]  ;;  %v340_v15 = vld [vmem:[%s2056_s25 + $0x28] sm:$0xff]  ;;  %v349_v17 = vld [vmem:[%s2056_s25 + $0x70] sm:$0xff] }
  0x1d   : > { %400 = vperm.xlu1 %1740, %v344_v3   ;;  %v347_v18 = vld [vmem:[%s2056_s25 + $0x60] sm:$0xff]  ;;  %p1886_p12 = pnand %p1885_p11, %p2042_p5  ;;  %p1893_p2 = por %p1892_p1, %p1891_p0 }
  0x1e   : > { %360 = vperm.xlu0 %1739, %v336_v4  }
  0x1f   : > { %p1887_p13 = pneg %p1886_p12 }
  0x21   : > { %370 = vperm.xlu1 %1740, %v338_v5   ;;  %p1894_p3 = pnand %p1893_p2, %p1887_p13 }
  0x22   : > { %365 = vperm.xlu0 %1739, %v337_v6  }
  0x25   : > { %410 = vperm.xlu1 %1740, %v346_v7  }
  0x26   : > { %405 = vperm.xlu0 %1739, %v345_v8  }
  0x29   : > { %1741 = vset.pattern.permute.xlu1 %v1949_v10 }
  0x2a   : > { %375 = vperm.xlu0 %1739, %v339_v9   ;;  %480 = vperm.xlu1 %1741, %v336_v4  }
  0x2e   : > { %420 = vperm.xlu0 %1739, %v348_v11   ;;  %508 = vperm.xlu1 %1741, %v343_v1  }
  0x32   : > { %390 = vperm.xlu0 %1739, %v342_v12   ;;  %484 = vperm.xlu1 %1741, %v337_v6  }
  0x36   : > { %430 = vperm.xlu0 %1739, %v350_v13   ;;  %516 = vperm.xlu1 %1741, %v345_v8  }
  0x3a   : > { %1744 = vset.pattern.permute.xlu0 %v1949_v10  ;;  %1742 = vset.pattern.permute.xlu1 %v1950_v14 }
  0x3b   : > { %476 = vperm.xlu0 %1744, %v335_v2   ;;  %576 = vperm.xlu1 %1742, %v335_v2  }
  0x3f   : > { %512 = vperm.xlu0 %1744, %v344_v3   ;;  %608 = vperm.xlu1 %1742, %v343_v1  }
  0x43   : > { %488 = vperm.xlu0 %1744, %v338_v5   ;;  %612 = vperm.xlu1 %1742, %v344_v3  }
  0x47   : > { %520 = vperm.xlu0 %1744, %v346_v7   ;;  %588 = vperm.xlu1 %1742, %v338_v5  }
  0x4b   : > { %496 = vperm.xlu0 %1744, %v340_v15   ;;  %620 = vperm.xlu1 %1742, %v346_v7  }
  0x4f   : > { %500 = vperm.xlu0 %1744, %v341_v16   ;;  %1743 = vset.pattern.permute.xlu1 %v1948_v0 }
  0x50   : > { %380 = vperm.xlu1 %1743, %v340_v15  }
  0x53   : > { %532 = vperm.xlu0 %1744, %v349_v17  }
  0x54   : > { %415 = vperm.xlu1 %1743, %v347_v18  }
  0x57   : > { %1746 = vset.pattern.permute.xlu0 %v1950_v14 }
  0x58   : > { %580 = vperm.xlu0 %1746, %v336_v4   ;;  %385 = vperm.xlu1 %1743, %v341_v16  }
  0x5c   : > { %584 = vperm.xlu0 %1746, %v337_v6   ;;  %425 = vperm.xlu1 %1743, %v349_v17  }
  0x60   : > { %616 = vperm.xlu0 %1746, %v345_v8   ;;  %1745 = vset.pattern.permute.xlu1 %v1949_v10 }
  0x61   : > { %492 = vperm.xlu1 %1745, %v339_v9  }
  0x64   : > { %592 = vperm.xlu0 %1746, %v339_v9  }
  0x65   : > { %524 = vperm.xlu1 %1745, %v347_v18  }
  0x68   : > { %628 = vperm.xlu0 %1746, %v348_v11  }
  0x69   : > { %528 = vperm.xlu1 %1745, %v348_v11  }
  0x6c   : > { %604 = vperm.xlu0 %1746, %v342_v12  }
  0x6d   : > { %504 = vperm.xlu1 %1745, %v342_v12  }
  0x70   : > { %636 = vperm.xlu0 %1746, %v350_v13  }
  0x71   : > { %536 = vperm.xlu1 %1745, %v350_v13  }
  0x75   : > { %1747 = vset.pattern.permute.xlu1 %v1950_v14 }
  0x76   : > { %596 = vperm.xlu1 %1747, %v340_v15  }
  0x7a   : > { %624 = vperm.xlu1 %1747, %v347_v18  }
  0x7e   : > { %600 = vperm.xlu1 %1747, %v341_v16  }
  0x82   : > { %632 = vperm.xlu1 %1747, %v349_v17  }
  0x98   : > { %v2074_v19 = vpop.permute.xlu1 %395 }
  0x99   : > { %v356_v20 = vpop.permute.xlu0 %355 }
  0x9a   : > { %v437_v42 = vmul.f32 %v2093_v37, %v356_v20 }
  0x9c   : > { %v401_v21 = vpop.permute.xlu1 %400  ;;  %v459_v47 = vadd.f32 %v2103_v43, %v437_v42 }
  0x9d   : > { %v2076_v22 = vpop.permute.xlu0 %360  ;;  %v446_v52 = vmul.f32 %v2093_v37, %v401_v21 }
  0x9e   : > { %v438_v17 = vmul.f32 %v2093_v37, %v2076_v22 }
  0x9f   : > { %v468_v57 = vadd.f32 %v2103_v43, %v446_v52 }
  0xa0   : > { %v371_v23 = vpop.permute.xlu1 %370 }
  0xa1   : > { %v2078_v24 = vpop.permute.xlu0 %365  ;;  %v440_v58 = vmul.f32 %v2093_v37, %v371_v23  ;;  %v445_v23 = vmul.f32 %v2093_v37, %v2074_v19 }
  0xa2   : > { %v439_v22 = vmul.f32 %v2093_v37, %v2078_v24 }
  0xa3   : > { %v462_v0 = vadd.f32 %v2103_v43, %v440_v58  ;;  %v467_v39 = vadd.f32 %v2103_v43, %v445_v23 }
  0xa4   : > { %v411_v25 = vpop.permute.xlu1 %410 }
  0xa5   : > { %v2080_v26 = vpop.permute.xlu0 %405  ;;  %v448_v1 = vmul.f32 %v2093_v37, %v411_v25  ;;  %v460_v25 = vadd.f32 %v2103_v43, %v438_v17 }
  0xa6   : > { %v447_v24 = vmul.f32 %v2093_v37, %v2080_v26 }
  0xa7   : > { %v470_v8 = vadd.f32 %v2103_v43, %v448_v1 }
  0xa9   : > { %v2082_v28 = vpop.permute.xlu0 %375  ;;  %v481_v29 = vpop.permute.xlu1 %480 }
  0xaa   : > { %v544_v20 = vmul.f32 %v2107_v45, %v481_v29 }
  0xac   : > { %v560_v30 = vadd.f32 %v544_v20, %v460_v25 }
  0xad   : > { %v2084_v31 = vpop.permute.xlu0 %420  ;;  %v509_v32 = vpop.permute.xlu1 %508 }
  0xae   : > { %v551_v33 = vmul.f32 %v2107_v45, %v509_v32 }
  0xb0   : > { %v567_v19 = vadd.f32 %v551_v33, %v467_v39 }
  0xb1   : > { %v2089_v35 = vpop.permute.xlu0 %390  ;;  %v2091_v36 = vpop.permute.xlu1 %484 }
  0xb5   : > { %v2095_v40 = vpop.permute.xlu0 %430  ;;  %v2097_v41 = vpop.permute.xlu1 %516 }
  0xba   : > { %v477_v46 = vpop.permute.xlu0 %476  ;;  %v577_v49 = vpop.permute.xlu1 %576 }
  0xbb   : > { %v543_v48 = vmul.f32 %v2107_v45, %v477_v46  ;;  %v643_v50 = vmul.f32 %v2105_v44, %v577_v49  ;;  %v461_v49 = vadd.f32 %v2103_v43, %v439_v22 }
  0xbd   : > { %v559_v51 = vadd.f32 %v543_v48, %v459_v47  ;;  %v545_v47 = vmul.f32 %v2107_v45, %v2091_v36  ;;  %v553_v36 = vmul.f32 %v2107_v45, %v2097_v41 }
  0xbe   : > { %v513_v53 = vpop.permute.xlu0 %512  ;;  %v609_v55 = vpop.permute.xlu1 %608 }
  0xbf   : > { %v2113_v54 = vadd.f32 %v643_v50, %v559_v51  ;;  %v552_v56 = vmul.f32 %v2107_v45, %v513_v53  ;;  %v651_v29 = vmul.f32 %v2105_v44, %v609_v55  ;;  %v561_v53 = vadd.f32 %v545_v47, %v461_v49 }
  0xc0   : > { %v452_v47 = vmul.f32 %v2093_v37, %v2095_v40 }
  0xc1   : > { %677 = vadd.xlane.f32.xlu1 %v2113_v54  ;;  %v568_v61 = vadd.f32 %v552_v56, %v468_v57  ;;  %v2166_v50 = vadd.f32 %v651_v29, %v567_v19  ;;  %v469_v57 = vadd.f32 %v2103_v43, %v447_v24 }
  0xc2   : > { %v489_v59 = vpop.permute.xlu0 %488  ;;  %v613_v60 = vpop.permute.xlu1 %612 }
  0xc3   : > { %v546_v62 = vmul.f32 %v2107_v45, %v489_v59  ;;  %v652_v63 = vmul.f32 %v2105_v44, %v613_v60  ;;  %v569_v59 = vadd.f32 %v553_v36, %v469_v57 }
  0xc5   : > { %v2123_v2 = vadd.f32 %v652_v63, %v568_v61  ;;  %v562_v5 = vadd.f32 %v546_v62, %v462_v0  ;;  %v725_v0 = vmul.f32 %v2113_v54, %v2113_v54 }
  0xc6   : > { %v521_v3 = vpop.permute.xlu0 %520  ;;  %v589_v4 = vpop.permute.xlu1 %588 }
  0xc7   : > { %v554_v6 = vmul.f32 %v2107_v45, %v521_v3  ;;  %v646_v7 = vmul.f32 %v2105_v44, %v589_v4  ;;  %695 = vadd.xlane.f32.xlu1 %v2123_v2  ;;  %v734_v55 = vmul.f32 %v2123_v2, %v2123_v2  ;;  %v733_v4 = vmul.f32 %v2166_v50, %v2166_v50 }
  0xc9   : > { %v2129_v9 = vadd.f32 %v646_v7, %v562_v5  ;;  %v570_v12 = vadd.f32 %v554_v6, %v470_v8  ;;  %v441_v6 = vmul.f32 %v2093_v37, %v2082_v28 }
  0xca   : > { %v2131_v10 = vpop.permute.xlu0 %496  ;;  %v621_v11 = vpop.permute.xlu1 %620 }
  0xcb   : > { %v654_v13 = vmul.f32 %v2105_v44, %v621_v11  ;;  %683 = vadd.xlane.f32.xlu1 %v2129_v9  ;;  %v728_v60 = vmul.f32 %v2129_v9, %v2129_v9  ;;  %v463_v17 = vadd.f32 %v2103_v43, %v441_v6  ;;  %v548_v28 = vmul.f32 %v2107_v45, %v2131_v10 }
  0xcd   : > { %v2135_v14 = vadd.f32 %v654_v13, %v570_v12  ;;  %v450_v12 = vmul.f32 %v2093_v37, %v2084_v31 }
  0xce   : > { %v2137_v15 = vpop.permute.xlu0 %500 }
  0xcf   : > { %v381_v16 = vpop.permute.xlu1 %380  ;;  %699 = vadd.xlane.f32.xlu1 %v2135_v14  ;;  %v736_v62 = vmul.f32 %v2135_v14, %v2135_v14  ;;  %v472_v39 = vadd.f32 %v2103_v43, %v450_v12 }
  0xd0   : > { %v442_v5 = vmul.f32 %v2093_v37, %v381_v16  ;;  %v444_v16 = vmul.f32 %v2093_v37, %v2089_v35 }
  0xd2   : > { %v2142_v18 = vpop.permute.xlu0 %532  ;;  %v464_v13 = vadd.f32 %v2103_v43, %v442_v5  ;;  %v466_v19 = vadd.f32 %v2103_v43, %v444_v16  ;;  %v1751_v16 = vld [vmem:[%s2721_s5 + $0x18] sm:$0xff]  }
  0xd3   : > { %v416_v21 = vpop.permute.xlu1 %415 }
  0xd4   : > { %v449_v23 = vmul.f32 %v2093_v37, %v416_v21  ;;  %v564_v22 = vadd.f32 %v548_v28, %v464_v13  ;;  %v1750_v13 = vld [vmem:[%s2721_s5 + $0x10] sm:$0xff]  }
  0xd6   : > { %v471_v21 = vadd.f32 %v2103_v43, %v449_v23 }
  0xd7   : > { %v581_v27 = vpop.permute.xlu0 %580  ;;  %v386_v38 = vpop.permute.xlu1 %385 }
  0xd8   : > { %v644_v34 = vmul.f32 %v2105_v44, %v581_v27  ;;  %v443_v27 = vmul.f32 %v2093_v37, %v386_v38 }
  0xda   : > { %v2154_v42 = vadd.f32 %v644_v34, %v560_v30 }
  0xdb   : > { %v585_v46 = vpop.permute.xlu0 %584  ;;  %v2158_v48 = vpop.permute.xlu1 %425 }
  0xdc   : > { %679 = vadd.xlane.f32.xlu0 %v2154_v42  ;;  %v726_v32 = vmul.f32 %v2154_v42, %v2154_v42  ;;  %v645_v51 = vmul.f32 %v2105_v44, %v585_v46 }
  0xde   : > { %743 = vadd.xlane.f32.xlu1 %v726_v32  ;;  %v2175_v58 = vadd.f32 %v645_v51, %v561_v53  ;;  %v465_v32 = vadd.f32 %v2103_v43, %v443_v27 }
  0xdf   : > { %v617_v52 = vpop.permute.xlu0 %616 }
  0xe0   : > { %693 = vadd.xlane.f32.xlu0 %v2166_v50  ;;  %v493_v56 = vpop.permute.xlu1 %492  ;;  %v653_v26 = vmul.f32 %v2105_v44, %v617_v52  ;;  %v727_v11 = vmul.f32 %v2175_v58, %v2175_v58  ;;  %v451_v52 = vmul.f32 %v2093_v37, %v2158_v48  ;;  %v474_v37 = vadd.f32 %v2103_v43, %v452_v47 }
  0xe1   : > { %v547_v8 = vmul.f32 %v2107_v45, %v493_v56  ;;  %v549_v56 = vmul.f32 %v2107_v45, %v2137_v15 }
  0xe2   : > { %759 = vadd.xlane.f32.xlu1 %v734_v55  ;;  %v2181_v61 = vadd.f32 %v653_v26, %v569_v59 }
  0xe3   : > { %v593_v3 = vpop.permute.xlu0 %592  ;;  %v563_v30 = vadd.f32 %v547_v8, %v463_v17  ;;  %v1748_v8 = vld [vmem:[%s2721_s5] sm:$0xff]  }
  0xe4   : > { %681 = vadd.xlane.f32.xlu0 %v2175_v58  ;;  %v525_v41 = vpop.permute.xlu1 %524  ;;  %v647_v31 = vmul.f32 %v2105_v44, %v593_v3  ;;  %v735_v34 = vmul.f32 %v2181_v61, %v2181_v61  ;;  %1647 = vmatprep.subr.bf16.mxu0 %v1748_v8 }
  0xe5   : > { %v555_v35 = vmul.f32 %v2107_v45, %v525_v41  ;;  %1679 = vmatprep.subr.bf16.mxu1 %v1748_v8  ;;  %1648 = vmatpush3.bf16.msra.mxu0 %v1748_v8 }
  0xe6   : > { %747 = vadd.xlane.f32.xlu1 %v728_v60  ;;  %v2221_v49 = vadd.f32 %v647_v31, %v563_v30  ;;  %v473_v60 = vadd.f32 %v2103_v43, %v451_v52  ;;  %1687 = vmatpush3.bf16.msra.mxu1 %v1748_v8  ;;  %v1753_v31 = vld [vmem:[%s2721_s5 + $0x28] sm:$0xff]  }
  0xe7   : > { %v629_v20 = vpop.permute.xlu0 %628  ;;  %v571_v53 = vadd.f32 %v555_v35, %v471_v21 }
  0xe8   : > { %697 = vadd.xlane.f32.xlu0 %v2181_v61  ;;  %v529_v63 = vpop.permute.xlu1 %528  ;;  %v656_v36 = vmul.f32 %v2105_v44, %v629_v20  ;;  %v729_v12 = vmul.f32 %v2221_v49, %v2221_v49 }
  0xe9   : > { %v556_v25 = vmul.f32 %v2107_v45, %v529_v63 }
  0xea   : > { %763 = vadd.xlane.f32.xlu1 %v736_v62  ;;  %v565_v62 = vadd.f32 %v549_v56, %v465_v32 }
  0xeb   : > { %v572_v29 = vadd.f32 %v556_v25, %v472_v39  ;;  %v605_v24 = vpop.permute.xlu0 %604  ;;  %v1752_v25 = vld [vmem:[%s2721_s5 + $0x20] sm:$0xff]  }
  0xec   : > { %741 = vadd.xlane.f32.xlu0 %v725_v0  ;;  %v505_v1 = vpop.permute.xlu1 %504  ;;  %v650_v41 = vmul.f32 %v2105_v44, %v605_v24  ;;  %v557_v0 = vmul.f32 %v2107_v45, %v2142_v18 }
  0xed   : > { %v550_v38 = vmul.f32 %v2107_v45, %v505_v1  ;;  %v2234_v59 = vadd.f32 %v656_v36, %v572_v29 }
  0xee   : > { %v573_v6 = vadd.f32 %v557_v0, %v473_v60 }
  0xef   : > { %v566_v40 = vadd.f32 %v550_v38, %v466_v19  ;;  %v637_v15 = vpop.permute.xlu0 %636  ;;  %v738_v17 = vmul.f32 %v2234_v59, %v2234_v59 }
  0xf0   : > { %757 = vadd.xlane.f32.xlu0 %v733_v4  ;;  %v537_v7 = vpop.permute.xlu1 %536  ;;  %v658_v43 = vmul.f32 %v2105_v44, %v637_v15 }
  0xf1   : > { %v558_v57 = vmul.f32 %v2107_v45, %v537_v7  ;;  %v2246_v4 = vadd.f32 %v650_v41, %v566_v40 }
  0xf3   : > { %v574_v1 = vadd.f32 %v558_v57, %v474_v37  ;;  %v732_v28 = vmul.f32 %v2246_v4, %v2246_v4 }
  0xf4   : > { %745 = vadd.xlane.f32.xlu0 %v727_v11 }
  0xf5   : > { %v597_v33 = vpop.permute.xlu1 %596  ;;  %v2257_v18 = vadd.f32 %v658_v43, %v574_v1 }
  0xf6   : > { %v648_v10 = vmul.f32 %v2105_v44, %v597_v33  ;;  %v1754_v33 = vld [vmem:[%s2721_s5 + $0x30] sm:$0xff]  }
  0xf7   : > { %v740_v27 = vmul.f32 %v2257_v18, %v2257_v18 }
  0xf8   : > { %761 = vadd.xlane.f32.xlu0 %v735_v34  ;;  %v2215_v46 = vadd.f32 %v648_v10, %v564_v22  ;;  %v1755_v34 = vld [vmem:[%s2721_s5 + $0x38] sm:$0xff]  }
  0xf9   : > { %v625_v51 = vpop.permute.xlu1 %624 }
  0xfa   : > { %v655_v55 = vmul.f32 %v2105_v44, %v625_v51  ;;  %687 = vadd.xlane.f32.xlu1 %v2215_v46  ;;  %v730_v11 = vmul.f32 %v2215_v46, %v2215_v46 }
  0xfc   : > { %685 = vadd.xlane.f32.xlu0 %v2221_v49  ;;  %v2232_v26 = vadd.f32 %v655_v55, %v571_v53 }
  0xfd   : > { %v601_v48 = vpop.permute.xlu1 %600 }
  0xfe   : > { %v649_v63 = vmul.f32 %v2105_v44, %v601_v48  ;;  %703 = vadd.xlane.f32.xlu1 %v2234_v59  ;;  %v737_v20 = vmul.f32 %v2232_v26, %v2232_v26 }
 0x100   : > { %701 = vadd.xlane.f32.xlu0 %v2232_v26  ;;  %v2244_v3 = vadd.f32 %v649_v63, %v565_v62 }
 0x101   : > { %v633_v5 = vpop.permute.xlu1 %632 }
 0x102   : > { %v657_v7 = vmul.f32 %v2105_v44, %v633_v5  ;;  %691 = vadd.xlane.f32.xlu1 %v2246_v4  ;;  %v1749_v44 = vld [vmem:[%s2721_s5 + $0x8] sm:$0xff]   ;;  %v731_v23 = vmul.f32 %v2244_v3, %v2244_v3 }
 0x103   : > { %1649 = vmatprep.subr.bf16.mxu0 %v1749_v44  ;;  %1680 = vmatprep.subr.bf16.mxu1 %v1749_v44 }
 0x104   : > { %689 = vadd.xlane.f32.xlu0 %v2244_v3  ;;  %v2255_v45 = vadd.f32 %v657_v7, %v573_v6  ;;  %1650 = vmatpush3.bf16.msra.mxu0 %v1749_v44 }
 0x105   : > { %1688 = vmatpush3.bf16.msra.mxu1 %v1749_v44  ;;  %1651 = vmatprep.subr.bf16.mxu0 %v1750_v13 }
 0x106   : > { %707 = vadd.xlane.f32.xlu1 %v2257_v18  ;;  %1681 = vmatprep.subr.bf16.mxu1 %v1750_v13  ;;  %v739_v30 = vmul.f32 %v2255_v45, %v2255_v45 }
 0x108   : > { %705 = vadd.xlane.f32.xlu0 %v2255_v45  ;;  %1652 = vmatpush3.bf16.msra.mxu0 %v1750_v13 }
 0x109   : > { %1689 = vmatpush3.bf16.msra.mxu1 %v1750_v13  ;;  %1653 = vmatprep.subr.bf16.mxu0 %v1751_v16 }
 0x10a   : > { %751 = vadd.xlane.f32.xlu1 %v730_v11  ;;  %1682 = vmatprep.subr.bf16.mxu1 %v1751_v16 }
 0x10c   : > { %749 = vadd.xlane.f32.xlu0 %v729_v12  ;;  %1654 = vmatpush3.bf16.msra.mxu0 %v1751_v16 }
 0x10d   : > { %1690 = vmatpush3.bf16.msra.mxu1 %v1751_v16  ;;  %1655 = vmatprep.subr.bf16.mxu0 %v1752_v25 }
 0x10e   : > { %767 = vadd.xlane.f32.xlu1 %v738_v17  ;;  %1683 = vmatprep.subr.bf16.mxu1 %v1752_v25 }
 0x110   : > { %765 = vadd.xlane.f32.xlu0 %v737_v20  ;;  %1656 = vmatpush3.bf16.msra.mxu0 %v1752_v25 }
 0x111   : > { %1691 = vmatpush3.bf16.msra.mxu1 %v1752_v25  ;;  %1657 = vmatprep.subr.bf16.mxu0 %v1753_v31 }
 0x112   : > { %755 = vadd.xlane.f32.xlu1 %v732_v28  ;;  %1684 = vmatprep.subr.bf16.mxu1 %v1753_v31 }
 0x114   : > { %753 = vadd.xlane.f32.xlu0 %v731_v23  ;;  %1658 = vmatpush3.bf16.msra.mxu0 %v1753_v31 }
 0x115   : > { %1692 = vmatpush3.bf16.msra.mxu1 %v1753_v31  ;;  %1659 = vmatprep.subr.bf16.mxu0 %v1754_v33 }
 0x116   : > { %771 = vadd.xlane.f32.xlu1 %v740_v27  ;;  %1685 = vmatprep.subr.bf16.mxu1 %v1754_v33 }
 0x118   : > { %769 = vadd.xlane.f32.xlu0 %v739_v30  ;;  %1660 = vmatpush3.bf16.msra.mxu0 %v1754_v33 }
 0x119   : > { %1693 = vmatpush3.bf16.msra.mxu1 %v1754_v33  ;;  %1661 = vmatprep.subr.bf16.mxu0 %v1755_v34 }
 0x11a   : > { %1686 = vmatprep.subr.bf16.mxu1 %v1755_v34 }
 0x11c   : > { %1662 = vmatpush3.bf16.msra.mxu0 %v1755_v34 }
 0x11d   : > { %1694 = vmatpush3.bf16.msra.mxu1 %v1755_v34 }
 0x14e   : > { %v678_v39 = vpop.xlane.xlu1 %677 }
 0x14f   : > { %v709_v63 = vmul.f32 0.015625, %v678_v39 }
 0x151   : > { %v789_v7 = vmul.f32 %v709_v63, %v709_v63 }
 0x154   : > { %v696_v35 = vpop.xlane.xlu1 %695 }
 0x155   : > { %v718_v32 = vmul.f32 0.015625, %v696_v35 }
 0x157   : > { %v798_v36 = vmul.f32 %v718_v32, %v718_v32 }
 0x158   : > { %v684_v22 = vpop.xlane.xlu1 %683 }
 0x159   : > { %v2298_v55 = vmul.f32 0.015625, %v684_v22 }
 0x15b   : > { %v792_v60 = vmul.f32 %v2298_v55, %v2298_v55 }
 0x15c   : > { %v700_v10 = vpop.xlane.xlu1 %699 }
 0x15d   : > { %v2302_v41 = vmul.f32 0.015625, %v700_v10 }
 0x15f   : > { %v800_v43 = vmul.f32 %v2302_v41, %v2302_v41 }
 0x169   : > { %v680_v21 = vpop.xlane.xlu0 %679 }
 0x16a   : > { %v710_v29 = vmul.f32 0.015625, %v680_v21 }
 0x16b   : > { %v744_v38 = vpop.xlane.xlu1 %743 }
 0x16c   : > { %v790_v19 = vmul.f32 %v710_v29, %v710_v29  ;;  %v774_v47 = vmul.f32 0.015625, %v744_v38  ;;  %v822_v31 = vsub.f32 %v2154_v42, %v710_v29 }
 0x16d   : > { %v694_v24 = vpop.xlane.xlu0 %693 }
 0x16e   : > { %v806_v51 = vsub.f32 %v774_v47, %v790_v19  ;;  %v717_v8 = vmul.f32 0.015625, %v694_v24  ;;  %v2312_v19 = vld [vmem:[%s2719_s3] ss:$0 sm:$0xff]  ;;  %v830_v24 = vsub.f32 %v2123_v2, %v718_v32  ;;  %v824_v32 = vsub.f32 %v2129_v9, %v2298_v55 }
 0x16f   : > { %v760_v52 = vpop.xlane.xlu1 %759 }
 0x170   : > { %v782_v53 = vmul.f32 0.015625, %v760_v52  ;;  %v838_v40 = vadd.f32 1e-05, %v806_v51  ;;  %v797_v20 = vmul.f32 %v717_v8, %v717_v8 }
 0x171   : > { %v682_v56 = vpop.xlane.xlu0 %681 }
 0x172   : > { %v814_v57 = vsub.f32 %v782_v53, %v798_v36  ;;  %1756 = vrsqrt.f32 %v838_v40  ;;  %v711_v16 = vmul.f32 0.015625, %v682_v56 }
 0x173   : > { %v748_v37 = vpop.xlane.xlu1 %747 }
 0x174   : > { %v776_v48 = vmul.f32 0.015625, %v748_v37  ;;  %v846_v15 = vadd.f32 1e-05, %v814_v57  ;;  %v791_v34 = vmul.f32 %v711_v16, %v711_v16  ;;  %v821_v57 = vsub.f32 %v2113_v54, %v709_v63 }
 0x175   : > { %v698_v62 = vpop.xlane.xlu0 %697  ;;  %v829_v63 = vsub.f32 %v2166_v50, %v717_v8 }
 0x176   : > { %v808_v0 = vsub.f32 %v776_v48, %v792_v60  ;;  %1758 = vrsqrt.f32 %v846_v15  ;;  %v2307_v39 = vmul.f32 0.015625, %v698_v62  ;;  %v2322_v48 = vld [vmem:[%s2720_s4] ss:$0 sm:$0xff] }
 0x177   : > { %v764_v1 = vpop.xlane.xlu1 %763 }
 0x178   : > { %v784_v5 = vmul.f32 0.015625, %v764_v1  ;;  %v840_v11 = vadd.f32 1e-05, %v808_v0  ;;  %v799_v42 = vmul.f32 %v2307_v39, %v2307_v39 }
 0x179   : > { %v742_v6 = vpop.xlane.xlu0 %741 }
 0x17a   : > { %v773_v44 = vmul.f32 0.015625, %v742_v6  ;;  %v816_v12 = vsub.f32 %v784_v5, %v800_v43  ;;  %1760 = vrsqrt.f32 %v840_v11 }
 0x17c   : > { %v805_v13 = vsub.f32 %v773_v44, %v789_v7  ;;  %v848_v25 = vadd.f32 1e-05, %v816_v12  ;;  %v1757_v30 = vpop.eup %1756  ;;  %v832_v44 = vsub.f32 %v2135_v14, %v2302_v41 }
 0x17d   : > { %v758_v17 = vpop.xlane.xlu0 %757  ;;  %v870_v10 = vmul.f32 %v1757_v30, %v822_v31  ;;  %v831_v30 = vsub.f32 %v2181_v61, %v2307_v39 }
 0x17e   : > { %v837_v28 = vadd.f32 1e-05, %v805_v13  ;;  %v781_v23 = vmul.f32 0.015625, %v758_v17 }
 0x17f   : > { %v892_v56 = vmul.f32 %v2312_v19, %v870_v10 }
 0x180   : > { %1762 = vrsqrt.f32 %v837_v28  ;;  %v813_v27 = vsub.f32 %v781_v23, %v797_v20  ;;  %v1759_v38 = vpop.eup %1758  ;;  %v823_v20 = vsub.f32 %v2175_v58, %v711_v16 }
 0x181   : > { %v746_v33 = vpop.xlane.xlu0 %745  ;;  %1764 = vrsqrt.f32 %v848_v25  ;;  %v878_v52 = vmul.f32 %v1759_v38, %v830_v24  ;;  %v914_v1 = vadd.f32 %v2322_v48, %v892_v56 }
 0x182   : > { %v845_v35 = vadd.f32 1e-05, %v813_v27  ;;  %v775_v22 = vmul.f32 0.015625, %v746_v33 }
 0x183   : > { %v900_v5 = vmul.f32 %v2312_v19, %v878_v52 }
 0x184   : > { %1766 = vrsqrt.f32 %v845_v35  ;;  %v807_v21 = vsub.f32 %v775_v22, %v791_v34  ;;  %v1761_v40 = vpop.eup %1760 }
 0x185   : > { %v762_v47 = vpop.xlane.xlu0 %761  ;;  %v872_v15 = vmul.f32 %v1761_v40, %v824_v32  ;;  %v922_v17 = vadd.f32 %v2322_v48, %v900_v5 }
 0x186   : > { %v839_v29 = vadd.f32 1e-05, %v807_v21  ;;  %v783_v51 = vmul.f32 0.015625, %v762_v47 }
 0x187   : > { %v688_v36 = vpop.xlane.xlu1 %687  ;;  %v894_v11 = vmul.f32 %v2312_v19, %v872_v15 }
 0x188   : > { %1768 = vrsqrt.f32 %v839_v29  ;;  %v815_v53 = vsub.f32 %v783_v51, %v799_v42  ;;  %v2343_v58 = vmul.f32 0.015625, %v688_v36 }
 0x189   : > { %v686_v37 = vpop.xlane.xlu0 %685  ;;  %v916_v27 = vadd.f32 %v2322_v48, %v894_v11 }
 0x18a   : > { %v1763_v2 = vpop.eup %1762  ;;  %v847_v60 = vadd.f32 1e-05, %v815_v53  ;;  %v2345_v34 = vmul.f32 0.015625, %v686_v37  ;;  %v794_v39 = vmul.f32 %v2343_v58, %v2343_v58 }
 0x18b   : > { %v869_v62 = vmul.f32 %v1763_v2, %v821_v57  ;;  %v704_v0 = vpop.xlane.xlu1 %703  ;;  %v1765_v54 = vpop.eup %1764 }
 0x18c   : > { %1770 = vrsqrt.f32 %v847_v60  ;;  %v880_v12 = vmul.f32 %v1765_v54, %v832_v44  ;;  %v2348_v10 = vmul.f32 0.015625, %v704_v0  ;;  %v793_v29 = vmul.f32 %v2345_v34, %v2345_v34 }
 0x18d   : > { %v702_v43 = vpop.xlane.xlu0 %701  ;;  %v891_v6 = vmul.f32 %v2312_v19, %v869_v62  ;;  %1772 = vtanh.f32 %v914_v1 }
 0x18e   : > { %v1767_v7 = vpop.eup %1766  ;;  %v902_v41 = vmul.f32 %v2312_v19, %v880_v12  ;;  %v2356_v51 = vmul.f32 0.015625, %v702_v43  ;;  %v802_v40 = vmul.f32 %v2348_v10, %v2348_v10 }
 0x18f   : > { %v877_v9 = vmul.f32 %v1767_v7, %v829_v63  ;;  %v913_v55 = vadd.f32 %v2322_v48, %v891_v6  ;;  %v692_v13 = vpop.xlane.xlu1 %691 }
 0x190   : > { %v924_v38 = vadd.f32 %v2322_v48, %v902_v41  ;;  %v2361_v32 = vmul.f32 0.015625, %v692_v13  ;;  %v801_v1 = vmul.f32 %v2356_v51, %v2356_v51 }
 0x191   : > { %v690_v50 = vpop.xlane.xlu0 %689  ;;  %1774 = vtanh.f32 %v913_v55  ;;  %v899_v8 = vmul.f32 %v2312_v19, %v877_v9 }
 0x192   : > { %v1769_v28 = vpop.eup %1768  ;;  %1776 = vtanh.f32 %v922_v17  ;;  %v2365_v5 = vmul.f32 0.015625, %v690_v50  ;;  %v796_v55 = vmul.f32 %v2361_v32, %v2361_v32 }
 0x193   : > { %v871_v23 = vmul.f32 %v1769_v28, %v823_v20  ;;  %v921_v14 = vadd.f32 %v2322_v48, %v899_v8  ;;  %v708_v25 = vpop.xlane.xlu1 %707 }
 0x194   : > { %v2369_v11 = vmul.f32 0.015625, %v708_v25  ;;  %v795_v50 = vmul.f32 %v2365_v5, %v2365_v5 }
 0x195   : > { %v893_v31 = vmul.f32 %v2312_v19, %v871_v23  ;;  %v706_v16 = vpop.xlane.xlu0 %705  ;;  %1778 = vtanh.f32 %v921_v14 }
 0x196   : > { %v1771_v33 = vpop.eup %1770  ;;  %1780 = vtanh.f32 %v916_v27  ;;  %v2373_v8 = vmul.f32 0.015625, %v706_v16 }
 0x197   : > { %v879_v35 = vmul.f32 %v1771_v33, %v831_v30  ;;  %v915_v22 = vadd.f32 %v2322_v48, %v893_v31  ;;  %v752_v21 = vpop.xlane.xlu1 %751  ;;  %v1773_v42 = vpop.eup %1772  ;;  %v804_v31 = vmul.f32 %v2369_v11, %v2369_v11 }
 0x198   : > { %v778_v47 = vmul.f32 0.015625, %v752_v21  ;;  %v803_v16 = vmul.f32 %v2373_v8, %v2373_v8 }
 0x199   : > { %v901_v61 = vmul.f32 %v2312_v19, %v879_v35  ;;  %v750_v24 = vpop.xlane.xlu0 %749  ;;  %1782 = vtanh.f32 %v915_v22 }
 0x19a   : > { %v777_v52 = vmul.f32 0.015625, %v750_v24  ;;  %v810_v36 = vsub.f32 %v778_v47, %v794_v39  ;;  %1784 = vtanh.f32 %v924_v38  ;;  %v826_v24 = vsub.f32 %v2215_v46, %v2343_v58 }
 0x19b   : > { %v1775_v53 = vpop.eup %1774  ;;  %v923_v56 = vadd.f32 %v2322_v48, %v901_v61  ;;  %v768_v37 = vpop.xlane.xlu1 %767  ;;  %v833_v58 = vsub.f32 %v2232_v26, %v2356_v51 }
 0x19c   : > { %v809_v57 = vsub.f32 %v777_v52, %v793_v29  ;;  %v945_v2 = vpack.c.bf16 %v1773_v42, %v1775_v53  ;;  %v842_v60 = vadd.f32 1e-05, %v810_v36  ;;  %v786_v62 = vmul.f32 0.015625, %v768_v37  ;;  %v1777_v0 = vpop.eup %1776 }
 0x19d   : > { %v766_v15 = vpop.xlane.xlu0 %765  ;;  %1786 = vtanh.f32 %v923_v56  ;;  %v825_v53 = vsub.f32 %v2221_v49, %v2345_v34 }
 0x19e   : > { %v841_v54 = vadd.f32 1e-05, %v809_v57  ;;  %v785_v63 = vmul.f32 0.015625, %v766_v15  ;;  %1663 = vmatprep.mubr.bf16.mxu0 %v945_v2  ;;  %1788 = vrsqrt.f32 %v842_v60  ;;  %v818_v6 = vsub.f32 %v786_v62, %v802_v40 }
 0x19f   : > { %v1779_v43 = vpop.eup %1778  ;;  %v756_v44 = vpop.xlane.xlu1 %755  ;;  %v834_v2 = vsub.f32 %v2234_v59, %v2348_v10 }
 0x1a0   : > { %1790 = vrsqrt.f32 %v841_v54  ;;  %v817_v7 = vsub.f32 %v785_v63, %v801_v1  ;;  %v949_v9 = vpack.c.bf16 %v1777_v0, %v1779_v43  ;;  %v850_v12 = vadd.f32 1e-05, %v818_v6  ;;  %v1781_v20 = vpop.eup %1780 }
 0x1a1   : > { %v780_v13 = vmul.f32 0.015625, %v756_v44  ;;  %v754_v17 = vpop.xlane.xlu0 %753  ;;  %v828_v54 = vsub.f32 %v2246_v4, %v2361_v32  ;;  %v827_v63 = vsub.f32 %v2244_v3, %v2365_v5  ;;  %v836_v4 = vsub.f32 %v2257_v18, %v2369_v11 }
 0x1a2   : > { %v849_v28 = vadd.f32 1e-05, %v817_v7  ;;  %v779_v23 = vmul.f32 0.015625, %v754_v17  ;;  %1671 = vmatprep.mubr.bf16.mxu1 %v949_v9  ;;  %1792 = vrsqrt.f32 %v850_v12  ;;  %v835_v3 = vsub.f32 %v2255_v45, %v2373_v8 }
 0x1a3   : > { %v1783_v14 = vpop.eup %1782  ;;  %v812_v41 = vsub.f32 %v780_v13, %v796_v55  ;;  %v772_v30 = vpop.xlane.xlu1 %771 }
 0x1a4   : > { %1794 = vrsqrt.f32 %v849_v28  ;;  %v811_v27 = vsub.f32 %v779_v23, %v795_v50  ;;  %v946_v25 = vpack.c.bf16 %v1781_v20, %v1783_v14  ;;  %v788_v35 = vmul.f32 0.015625, %v772_v30  ;;  %v1785_v21 = vpop.eup %1784 }
 0x1a5   : > { %v844_v33 = vadd.f32 1e-05, %v812_v41  ;;  %v770_v22 = vpop.xlane.xlu0 %769 }
 0x1a6   : > { %v843_v38 = vadd.f32 1e-05, %v811_v27  ;;  %v787_v61 = vmul.f32 0.015625, %v770_v22  ;;  %1664 = vmatmul.mubr.bf16.vlgmr.msra.gmra.mrb[0].mxu0 %v946_v25  ;;  %v820_v47 = vsub.f32 %v788_v35, %v804_v31 }
 0x1a7   : > { %v1787_v39 = vpop.eup %1786  ;;  %1796 = vrsqrt.f32 %v844_v33 }
 0x1a8   : > { %1798 = vrsqrt.f32 %v843_v38  ;;  %v819_v42 = vsub.f32 %v787_v61, %v803_v16  ;;  %v950_v29 = vpack.c.bf16 %v1785_v21, %v1787_v39  ;;  %v1789_v52 = vpop.eup %1788  ;;  %v852_v36 = vadd.f32 1e-05, %v820_v47 }
 0x1a9   : > { %v874_v40 = vmul.f32 %v1789_v52, %v826_v24 }
 0x1aa   : > { %v1791_v56 = vpop.eup %1790  ;;  %v851_v57 = vadd.f32 1e-05, %v819_v42  ;;  %1672 = vmatmul.mubr.bf16.vlgmr.msra.gmra.mrb[0].mxu1 %v950_v29  ;;  %1800 = vrsqrt.f32 %v852_v36 }
 0x1ab   : > { %v873_v37 = vmul.f32 %v1791_v56, %v825_v53  ;;  %v896_v60 = vmul.f32 %v2312_v19, %v874_v40 }
 0x1ac   : > { %1802 = vrsqrt.f32 %v851_v57  ;;  %v1793_v46 = vpop.eup %1792 }
 0x1ad   : > { %v895_v62 = vmul.f32 %v2312_v19, %v873_v37  ;;  %v882_v34 = vmul.f32 %v1793_v46, %v834_v2  ;;  %v918_v15 = vadd.f32 %v2322_v48, %v896_v60 }
 0x1ae   : > { %v1795_v49 = vpop.eup %1794 }
 0x1af   : > { %v881_v0 = vmul.f32 %v1795_v49, %v833_v58  ;;  %v917_v1 = vadd.f32 %v2322_v48, %v895_v62  ;;  %v904_v59 = vmul.f32 %v2312_v19, %v882_v34  ;;  %1804 = vtanh.f32 %v918_v15 }
 0x1b1   : > { %v1797_v10 = vpop.eup %1796  ;;  %v903_v26 = vmul.f32 %v2312_v19, %v881_v0  ;;  %1806 = vtanh.f32 %v917_v1  ;;  %v926_v6 = vadd.f32 %v2322_v48, %v904_v59 }
 0x1b2   : > { %v1799_v51 = vpop.eup %1798  ;;  %v876_v43 = vmul.f32 %v1797_v10, %v828_v54 }
 0x1b3   : > { %v875_v7 = vmul.f32 %v1799_v51, %v827_v63  ;;  %v925_v44 = vadd.f32 %v2322_v48, %v903_v26  ;;  %1808 = vtanh.f32 %v926_v6 }
 0x1b4   : > { %v898_v32 = vmul.f32 %v2312_v19, %v876_v43  ;;  %v1801_v9 = vpop.eup %1800 }
 0x1b5   : > { %v897_v5 = vmul.f32 %v2312_v19, %v875_v7  ;;  %1810 = vtanh.f32 %v925_v44  ;;  %v884_v12 = vmul.f32 %v1801_v9, %v836_v4 }
 0x1b6   : > { %v1803_v55 = vpop.eup %1802  ;;  %v920_v13 = vadd.f32 %v2322_v48, %v898_v32 }
 0x1b7   : > { %v883_v17 = vmul.f32 %v1803_v55, %v835_v3  ;;  %v919_v20 = vadd.f32 %v2322_v48, %v897_v5  ;;  %v906_v50 = vmul.f32 %v2312_v19, %v884_v12 }
 0x1b8   : > { %1812 = vtanh.f32 %v920_v13 }
 0x1b9   : > { %v905_v18 = vmul.f32 %v2312_v19, %v883_v17  ;;  %1814 = vtanh.f32 %v919_v20  ;;  %v1805_v11 = vpop.eup %1804  ;;  %v928_v28 = vadd.f32 %v2322_v48, %v906_v50 }
 0x1bb   : > { %v1807_v45 = vpop.eup %1806  ;;  %v927_v8 = vadd.f32 %v2322_v48, %v905_v18  ;;  %1816 = vtanh.f32 %v928_v28  ;;  %v2414_v48 = vld [vmem:[%s2722_s6] ss:$0 sm:$0xff] }
 0x1bc   : > { %v947_v23 = vpack.c.bf16 %v1805_v11, %v1807_v45 }
 0x1bd   : > { %1818 = vtanh.f32 %v927_v8  ;;  %v1809_v14 = vpop.eup %1808 }
 0x1be   : > { %1667 = vmatprep.mubr.bf16.mxu0 %v947_v23 }
 0x1bf   : > { %v1811_v41 = vpop.eup %1810 }
 0x1c0   : > { %v951_v27 = vpack.c.bf16 %v1809_v14, %v1811_v41 }
 0x1c2   : > { %v1813_v30 = vpop.eup %1812  ;;  %1675 = vmatprep.mubr.bf16.mxu1 %v951_v27 }
 0x1c3   : > { %v1815_v25 = vpop.eup %1814 }
 0x1c4   : > { %v948_v31 = vpack.c.bf16 %v1813_v30, %v1815_v25 }
 0x1c5   : > { %v1817_v33 = vpop.eup %1816 }
 0x1c6   : > { %1668 = vmatmul.mubr.bf16.gmra.mrb[4].mxu0 %v948_v31 }
 0x1c7   : > { %v1819_v19 = vpop.eup %1818 }
 0x1c8   : > { %v952_v35 = vpack.c.bf16 %v1817_v33, %v1819_v19 }
 0x1ca   : > { %1676 = vmatmul.mubr.bf16.gmra.mrb[4].mxu1 %v952_v35 }
 0x279   : > { %v1665_v22 = vpop.f32.mrb[0].mxu0 }
 0x27a   : > { %v2417_v21 = vadd.f32 %v1665_v22, %v2414_v48  ;;  %v1058_v16 = vpop.f32.mrb[1].mxu0 }
 0x27b   : > { %v1666_v38 = vpop.f32.mrb[2].mxu0  ;;  %v2421_v47 = vadd.f32 %v2414_v48, %v1058_v16 }
 0x27c   : > { %1127 = vadd.xlane.f32.xlu0 %v2417_v21  ;;  %v1061_v61 = vpop.f32.mrb[3].mxu0  ;;  %v2437_v56 = vadd.f32 %v1666_v38, %v2414_v48  ;;  %v1173_v37 = vmul.f32 %v2417_v21, %v2417_v21 }
 0x27d   : > { %v1673_v39 = vpop.f32.mrb[0].mxu1  ;;  %v2443_v57 = vadd.f32 %v2414_v48, %v1061_v61  ;;  %v1171_v60 = vmul.f32 %v2421_v47, %v2421_v47 }
 0x27e   : > { %v2424_v24 = vadd.f32 %v1673_v39, %v2414_v48  ;;  %v1090_v42 = vpop.f32.mrb[1].mxu1  ;;  %v1174_v49 = vmul.f32 %v2437_v56, %v2437_v56 }
 0x27f   : > { %v1674_v29 = vpop.f32.mrb[2].mxu1  ;;  %v2429_v53 = vadd.f32 %v2414_v48, %v1090_v42  ;;  %v1172_v62 = vmul.f32 %v2443_v57, %v2443_v57 }
 0x280   : > { %1123 = vadd.xlane.f32.xlu0 %v2421_v47  ;;  %1143 = vadd.xlane.f32.xlu1 %v2424_v24  ;;  %v1093_v52 = vpop.f32.mrb[3].mxu1  ;;  %v2432_v36 = vadd.f32 %v1674_v29, %v2414_v48  ;;  %v1181_v40 = vmul.f32 %v2424_v24, %v2424_v24 }
 0x281   : > { %v2449_v2 = vadd.f32 %v2414_v48, %v1093_v52  ;;  %v1179_v58 = vmul.f32 %v2429_v53, %v2429_v53 }
 0x282   : > { %v1182_v46 = vmul.f32 %v2432_v36, %v2432_v36 }
 0x283   : > { %v1180_v1 = vmul.f32 %v2449_v2, %v2449_v2 }
 0x284   : > { %1145 = vadd.xlane.f32.xlu1 %v2432_v36  ;;  %1139 = vadd.xlane.f32.xlu0 %v2429_v53 }
 0x288   : > { %1207 = vadd.xlane.f32.xlu1 %v1181_v40  ;;  %1129 = vadd.xlane.f32.xlu0 %v2437_v56 }
 0x28c   : > { %1125 = vadd.xlane.f32.xlu1 %v2443_v57  ;;  %1191 = vadd.xlane.f32.xlu0 %v1173_v37 }
 0x290   : > { %1141 = vadd.xlane.f32.xlu1 %v2449_v2  ;;  %1187 = vadd.xlane.f32.xlu0 %v1171_v60 }
 0x294   : > { %1209 = vadd.xlane.f32.xlu1 %v1182_v46  ;;  %1203 = vadd.xlane.f32.xlu0 %v1179_v58 }
 0x298   : > { %1189 = vadd.xlane.f32.xlu1 %v1172_v62  ;;  %1193 = vadd.xlane.f32.xlu0 %v1174_v49 }
 0x299   : > { %v1669_v34 = vpop.f32.mrb[4].mxu0 }
 0x29a   : > { %v2463_v15 = vadd.f32 %v1669_v34, %v2414_v48  ;;  %v1074_v0 = vpop.f32.mrb[5].mxu0 }
 0x29b   : > { %v1670_v54 = vpop.f32.mrb[6].mxu0  ;;  %v2469_v63 = vadd.f32 %v2414_v48, %v1074_v0 }
 0x29c   : > { %1205 = vadd.xlane.f32.xlu1 %v1180_v1  ;;  %1135 = vadd.xlane.f32.xlu0 %v2463_v15  ;;  %v1077_v59 = vpop.f32.mrb[7].mxu0  ;;  %v2477_v7 = vadd.f32 %v1670_v54, %v2414_v48  ;;  %v1177_v32 = vmul.f32 %v2463_v15, %v2463_v15 }
 0x29d   : > { %v1677_v10 = vpop.f32.mrb[4].mxu1  ;;  %v2491_v9 = vadd.f32 %v2414_v48, %v1077_v59  ;;  %v1175_v55 = vmul.f32 %v2469_v63, %v2469_v63 }
 0x29e   : > { %v2472_v26 = vadd.f32 %v1677_v10, %v2414_v48  ;;  %v1106_v51 = vpop.f32.mrb[5].mxu1  ;;  %v1178_v17 = vmul.f32 %v2477_v7, %v2477_v7 }
 0x29f   : > { %v1678_v43 = vpop.f32.mrb[6].mxu1  ;;  %v2480_v44 = vadd.f32 %v2414_v48, %v1106_v51  ;;  %v1176_v12 = vmul.f32 %v2491_v9, %v2491_v9 }
 0x2a0   : > { %1131 = vadd.xlane.f32.xlu0 %v2469_v63  ;;  %1151 = vadd.xlane.f32.xlu1 %v2472_v26  ;;  %v1109_v6 = vpop.f32.mrb[7].mxu1  ;;  %v2485_v4 = vadd.f32 %v1678_v43, %v2414_v48  ;;  %v1185_v3 = vmul.f32 %v2472_v26, %v2472_v26 }
 0x2a1   : > { %v2497_v5 = vadd.f32 %v2414_v48, %v1109_v6  ;;  %v1183_v13 = vmul.f32 %v2480_v44, %v2480_v44 }
 0x2a2   : > { %v1186_v50 = vmul.f32 %v2485_v4, %v2485_v4 }
 0x2a3   : > { %v1184_v20 = vmul.f32 %v2497_v5, %v2497_v5 }
 0x2a4   : > { %1137 = vadd.xlane.f32.xlu0 %v2477_v7  ;;  %1147 = vadd.xlane.f32.xlu1 %v2480_v44 }
 0x2a8   : > { %1199 = vadd.xlane.f32.xlu0 %v1177_v32  ;;  %1153 = vadd.xlane.f32.xlu1 %v2485_v4 }
 0x2ac   : > { %1133 = vadd.xlane.f32.xlu0 %v2491_v9  ;;  %1215 = vadd.xlane.f32.xlu1 %v1185_v3 }
 0x2b0   : > { %1195 = vadd.xlane.f32.xlu0 %v1175_v55  ;;  %1149 = vadd.xlane.f32.xlu1 %v2497_v5 }
 0x2b4   : > { %1197 = vadd.xlane.f32.xlu0 %v1176_v12  ;;  %1211 = vadd.xlane.f32.xlu1 %v1183_v13 }
 0x2b8   : > { %1201 = vadd.xlane.f32.xlu0 %v1178_v17  ;;  %1213 = vadd.xlane.f32.xlu1 %v1184_v20 }
 0x2bc   : > { %1217 = vadd.xlane.f32.xlu1 %v1186_v50 }
 0x309   : > { %v1128_v18 = vpop.xlane.xlu0 %1127 }
 0x30a   : > { %v2512_v27 = vmul.f32 0.03125, %v1128_v18 }
 0x30c   : > { %v1237_v35 = vmul.f32 %v2512_v27, %v2512_v27 }
 0x30d   : > { %v1144_v11 = vpop.xlane.xlu1 %1143  ;;  %v1124_v28 = vpop.xlane.xlu0 %1123 }
 0x30e   : > { %v1165_v41 = vmul.f32 0.03125, %v1144_v11  ;;  %v2516_v48 = vmul.f32 0.03125, %v1124_v28 }
 0x310   : > { %v1245_v33 = vmul.f32 %v1165_v41, %v1165_v41  ;;  %v1235_v42 = vmul.f32 %v2516_v48, %v2516_v48 }
 0x311   : > { %v1146_v45 = vpop.xlane.xlu1 %1145  ;;  %v1140_v8 = vpop.xlane.xlu0 %1139 }
 0x312   : > { %v2522_v58 = vmul.f32 0.03125, %v1140_v8  ;;  %v2524_v62 = vmul.f32 0.03125, %v1146_v45 }
 0x314   : > { %v1243_v43 = vmul.f32 %v2522_v58, %v2522_v58  ;;  %v1246_v55 = vmul.f32 %v2524_v62, %v2524_v62 }
 0x315   : > { %v1208_v23 = vpop.xlane.xlu1 %1207  ;;  %v1130_v14 = vpop.xlane.xlu0 %1129 }
 0x316   : > { %v1229_v30 = vmul.f32 0.03125, %v1208_v23  ;;  %v2526_v49 = vmul.f32 0.03125, %v1130_v14 }
 0x318   : > { %v1261_v22 = vsub.f32 %v1229_v30, %v1245_v33  ;;  %v1238_v12 = vmul.f32 %v2526_v49, %v2526_v49  ;;  %v1277_v33 = vsub.f32 %v2424_v24, %v1165_v41  ;;  %v1267_v41 = vsub.f32 %v2421_v47, %v2516_v48 }
 0x319   : > { %v1126_v25 = vpop.xlane.xlu1 %1125  ;;  %v1192_v31 = vpop.xlane.xlu0 %1191 }
 0x31a   : > { %v1221_v19 = vmul.f32 0.03125, %v1192_v31  ;;  %v1293_v29 = vadd.f32 1e-05, %v1261_v22  ;;  %v2520_v52 = vmul.f32 0.03125, %v1126_v25 }
 0x31c   : > { %v1253_v61 = vsub.f32 %v1221_v19, %v1237_v35  ;;  %1820 = vrsqrt.f32 %v1293_v29  ;;  %v1236_v34 = vmul.f32 %v2520_v52, %v2520_v52 }
 0x31d   : > { %v1142_v16 = vpop.xlane.xlu1 %1141  ;;  %v1188_v38 = vpop.xlane.xlu0 %1187 }
 0x31e   : > { %v1219_v39 = vmul.f32 0.03125, %v1188_v38  ;;  %v1285_v60 = vadd.f32 1e-05, %v1253_v61  ;;  %v2530_v59 = vmul.f32 0.03125, %v1142_v16  ;;  %v1269_v16 = vsub.f32 %v2417_v21, %v2512_v27 }
 0x320   : > { %v1251_v46 = vsub.f32 %v1219_v39, %v1235_v42  ;;  %1822 = vrsqrt.f32 %v1285_v60  ;;  %v1244_v50 = vmul.f32 %v2530_v59, %v2530_v59  ;;  %v2546_v42 = vld [vmem:[%s2723_s7] ss:$0 sm:$0xff] }
 0x321   : > { %v1210_v40 = vpop.xlane.xlu1 %1209  ;;  %v1204_v37 = vpop.xlane.xlu0 %1203 }
 0x322   : > { %v1227_v0 = vmul.f32 0.03125, %v1204_v37  ;;  %v1283_v10 = vadd.f32 1e-05, %v1251_v46  ;;  %v1230_v32 = vmul.f32 0.03125, %v1210_v40  ;;  %v2558_v46 = vld [vmem:[%s2724_s8] ss:$0 sm:$0xff] }
 0x324   : > { %v1259_v13 = vsub.f32 %v1227_v0, %v1243_v43  ;;  %1824 = vrsqrt.f32 %v1283_v10  ;;  %v1262_v45 = vsub.f32 %v1230_v32, %v1246_v55  ;;  %v1276_v43 = vsub.f32 %v2449_v2, %v2530_v59 }
 0x325   : > { %v1190_v1 = vpop.xlane.xlu1 %1189  ;;  %v1194_v54 = vpop.xlane.xlu0 %1193  ;;  %v1278_v2 = vsub.f32 %v2432_v36, %v2524_v62  ;;  %v1275_v59 = vsub.f32 %v2429_v53, %v2522_v58 }
 0x326   : > { %v1220_v51 = vmul.f32 0.03125, %v1190_v1  ;;  %v1222_v6 = vmul.f32 0.03125, %v1194_v54  ;;  %v1291_v23 = vadd.f32 1e-05, %v1259_v13  ;;  %v1821_v25 = vpop.eup %1820  ;;  %v1294_v22 = vadd.f32 1e-05, %v1262_v45 }
 0x327   : > { %v1325_v38 = vmul.f32 %v1821_v25, %v1277_v33 }
 0x328   : > { %v1252_v3 = vsub.f32 %v1220_v51, %v1236_v34  ;;  %v1254_v28 = vsub.f32 %v1222_v6, %v1238_v12  ;;  %v1268_v34 = vsub.f32 %v2443_v57, %v2520_v52 }
 0x329   : > { %v1206_v17 = vpop.xlane.xlu1 %1205  ;;  %v1136_v20 = vpop.xlane.xlu0 %1135  ;;  %v1347_v21 = vmul.f32 %v2546_v42, %v1325_v38 }
 0x32a   : > { %v1284_v18 = vadd.f32 1e-05, %v1252_v3  ;;  %v1228_v11 = vmul.f32 0.03125, %v1206_v17  ;;  %v1286_v19 = vadd.f32 1e-05, %v1254_v28  ;;  %v1823_v35 = vpop.eup %1822  ;;  %v2548_v40 = vmul.f32 0.03125, %v1136_v20 }
 0x32b   : > { %v1317_v29 = vmul.f32 %v1823_v35, %v1269_v16  ;;  %v1369_v51 = vadd.f32 %v2558_v46, %v1347_v21 }
 0x32c   : > { %1826 = vrsqrt.f32 %v1284_v18  ;;  %v1260_v8 = vsub.f32 %v1228_v11, %v1244_v50  ;;  %v1241_v48 = vmul.f32 %v2548_v40, %v2548_v40 }
 0x32d   : > { %v1152_v14 = vpop.xlane.xlu1 %1151  ;;  %v1132_v30 = vpop.xlane.xlu0 %1131  ;;  %v1339_v54 = vmul.f32 %v2546_v42, %v1317_v29 }
 0x32e   : > { %v1292_v31 = vadd.f32 1e-05, %v1260_v8  ;;  %v1825_v24 = vpop.eup %1824  ;;  %v2562_v0 = vmul.f32 0.03125, %v1152_v14  ;;  %v2570_v6 = vmul.f32 0.03125, %v1132_v30  ;;  %v1270_v8 = vsub.f32 %v2437_v56, %v2526_v49 }
 0x32f   : > { %v1315_v47 = vmul.f32 %v1825_v24, %v1267_v41  ;;  %v1361_v17 = vadd.f32 %v2558_v46, %v1339_v54 }
 0x330   : > { %1828 = vrsqrt.f32 %v1292_v31  ;;  %v1249_v55 = vmul.f32 %v2562_v0, %v2562_v0 }
 0x331   : > { %1830 = vrsqrt.f32 %v1291_v23  ;;  %v1148_v61 = vpop.xlane.xlu1 %1147  ;;  %v1138_v39 = vpop.xlane.xlu0 %1137  ;;  %v1337_v20 = vmul.f32 %v2546_v42, %v1315_v47  ;;  %v1239_v23 = vmul.f32 %v2570_v6, %v2570_v6 }
 0x332   : > { %1832 = vrsqrt.f32 %v1286_v19  ;;  %v2585_v14 = vmul.f32 0.03125, %v1148_v61  ;;  %v2594_v16 = vmul.f32 0.03125, %v1138_v39 }
 0x333   : > { %1834 = vrsqrt.f32 %v1294_v22  ;;  %v1359_v58 = vadd.f32 %v2558_v46, %v1337_v20 }
 0x334   : > { %1836 = vtanh.f32 %v1369_v51  ;;  %v1247_v22 = vmul.f32 %v2585_v14, %v2585_v14 }
 0x335   : > { %v2553_v27 = vpop.xlane.xlu1 %1153  ;;  %v1200_v37 = vpop.xlane.xlu0 %1199 }
 0x336   : > { %v1827_v60 = vpop.eup %1826  ;;  %v1225_v1 = vmul.f32 0.03125, %v1200_v37 }
 0x337   : > { %v1316_v10 = vmul.f32 %v1827_v60, %v1268_v34 }
 0x338   : > { %v1257_v32 = vsub.f32 %v1225_v1, %v1241_v48 }
 0x339   : > { %v1216_v3 = vpop.xlane.xlu1 %1215  ;;  %v1134_v57 = vpop.xlane.xlu0 %1133  ;;  %v1338_v11 = vmul.f32 %v2546_v42, %v1316_v10  ;;  %v1273_v10 = vsub.f32 %v2463_v15, %v2548_v40  ;;  %v1242_v40 = vmul.f32 %v2594_v16, %v2594_v16 }
 0x33a   : > { %v1829_v52 = vpop.eup %1828  ;;  %v1233_v12 = vmul.f32 0.03125, %v1216_v3  ;;  %v1289_v18 = vadd.f32 1e-05, %v1257_v32  ;;  %v2587_v53 = vmul.f32 0.03125, %v1134_v57  ;;  %v2608_v3 = vmul.f32 0.03125, %v2553_v27 }
 0x33b   : > { %v1831_v13 = vpop.eup %1830  ;;  %v1324_v50 = vmul.f32 %v1829_v52, %v1276_v43  ;;  %v1360_v56 = vadd.f32 %v2558_v46, %v1338_v11  ;;  %v1281_v27 = vsub.f32 %v2472_v26, %v2562_v0 }
 0x33c   : > { %v1265_v28 = vsub.f32 %v1233_v12, %v1249_v55  ;;  %v1833_v45 = vpop.eup %1832  ;;  %v1323_v36 = vmul.f32 %v1831_v13, %v1275_v59  ;;  %1838 = vrsqrt.f32 %v1289_v18  ;;  %v1240_v41 = vmul.f32 %v2587_v53, %v2587_v53 }
 0x33d   : > { %v1150_v30 = vpop.xlane.xlu1 %1149  ;;  %v1196_v25 = vpop.xlane.xlu0 %1195  ;;  %1840 = vtanh.f32 %v1361_v17  ;;  %v1346_v33 = vmul.f32 %v2546_v42, %v1324_v50  ;;  %v1318_v49 = vmul.f32 %v1833_v45, %v1270_v8  ;;  %v1250_v45 = vmul.f32 %v2608_v3, %v2608_v3 }
 0x33e   : > { %v1835_v31 = vpop.eup %1834  ;;  %v1297_v62 = vadd.f32 1e-05, %v1265_v28  ;;  %v1223_v19 = vmul.f32 0.03125, %v1196_v25  ;;  %v1345_v24 = vmul.f32 %v2546_v42, %v1323_v36  ;;  %v2600_v34 = vmul.f32 0.03125, %v1150_v30 }
 0x33f   : > { %v1326_v35 = vmul.f32 %v1835_v31, %v1278_v2  ;;  %v1368_v60 = vadd.f32 %v2558_v46, %v1346_v33  ;;  %v1340_v39 = vmul.f32 %v2546_v42, %v1318_v49  ;;  %v1837_v55 = vpop.eup %1836 }
 0x340   : > { %1842 = vrsqrt.f32 %v1297_v62  ;;  %v1255_v38 = vsub.f32 %v1223_v19, %v1239_v23  ;;  %v1367_v32 = vadd.f32 %v2558_v46, %v1345_v24  ;;  %v1248_v12 = vmul.f32 %v2600_v34, %v2600_v34 }
 0x341   : > { %v1212_v61 = vpop.xlane.xlu1 %1211  ;;  %v1198_v29 = vpop.xlane.xlu0 %1197  ;;  %1844 = vtanh.f32 %v1359_v58  ;;  %v1348_v48 = vmul.f32 %v2546_v42, %v1326_v35  ;;  %v1362_v15 = vadd.f32 %v2558_v46, %v1340_v39  ;;  %v1271_v19 = vsub.f32 %v2469_v63, %v2570_v6 }
 0x342   : > { %v1231_v21 = vmul.f32 0.03125, %v1212_v61  ;;  %v1224_v37 = vmul.f32 0.03125, %v1198_v29  ;;  %v1287_v1 = vadd.f32 1e-05, %v1255_v38  ;;  %1846 = vtanh.f32 %v1360_v56 }
 0x343   : > { %v1370_v28 = vadd.f32 %v2558_v46, %v1348_v48  ;;  %v1451_v49 = vrot.slane %v1837_v55, 4 }
 0x344   : > { %v1263_v54 = vsub.f32 %v1231_v21, %v1247_v22  ;;  %v1256_v47 = vsub.f32 %v1224_v37, %v1240_v41  ;;  %1848 = vrsqrt.f32 %v1287_v1  ;;  %v1279_v22 = vsub.f32 %v2480_v44, %v2585_v14 }
 0x345   : > { %v1214_v51 = vpop.xlane.xlu1 %1213  ;;  %v1202_v43 = vpop.xlane.xlu0 %1201  ;;  %1850 = vtanh.f32 %v1368_v60  ;;  %v1272_v37 = vsub.f32 %v2491_v9, %v2587_v53  ;;  %v1452_v60 = vmax.f32 %v1837_v55, %v1451_v49  ;;  %v1280_v9 = vsub.f32 %v2497_v5, %v2600_v34 }
 0x346   : > { %v1295_v57 = vadd.f32 1e-05, %v1263_v54  ;;  %v1288_v52 = vadd.f32 1e-05, %v1256_v47  ;;  %v1232_v13 = vmul.f32 0.03125, %v1214_v51  ;;  %v1226_v17 = vmul.f32 0.03125, %v1202_v43  ;;  %v1839_v20 = vpop.eup %1838 }
 0x347   : > { %v1841_v50 = vpop.eup %1840  ;;  %v1321_v18 = vmul.f32 %v1839_v20, %v1273_v10 }
 0x348   : > { %1852 = vrsqrt.f32 %v1295_v57  ;;  %v1264_v2 = vsub.f32 %v1232_v13, %v1248_v12  ;;  %v1258_v8 = vsub.f32 %v1226_v17, %v1242_v40  ;;  %v1403_v39 = vrot.slane %v1841_v50, 4 }
 0x349   : > { %1854 = vrsqrt.f32 %v1288_v52  ;;  %v1218_v59 = vpop.xlane.xlu1 %1217  ;;  %v1343_v30 = vmul.f32 %v2546_v42, %v1321_v18  ;;  %v1453_v57 = vrot.slane %v1452_v60, 2  ;;  %v1274_v52 = vsub.f32 %v2477_v7, %v2594_v16 }
 0x34a   : > { %v1843_v11 = vpop.eup %1842  ;;  %v1234_v23 = vmul.f32 0.03125, %v1218_v59  ;;  %1856 = vtanh.f32 %v1367_v32  ;;  %v1296_v31 = vadd.f32 1e-05, %v1264_v2  ;;  %v1290_v36 = vadd.f32 1e-05, %v1258_v8 }
 0x34b   : > { %v1329_v25 = vmul.f32 %v1843_v11, %v1281_v27  ;;  %1858 = vtanh.f32 %v1362_v15  ;;  %v1845_v26 = vpop.eup %1844  ;;  %v1365_v0 = vadd.f32 %v2558_v46, %v1343_v30  ;;  %v1404_v13 = vmax.f32 %v1841_v50, %v1403_v39 }
 0x34c   : > { %1860 = vrsqrt.f32 %v1296_v31  ;;  %v1266_v58 = vsub.f32 %v1234_v23, %v1250_v45  ;;  %v1847_v33 = vpop.eup %1846  ;;  %v1391_v29 = vrot.slane %v1845_v26, 4  ;;  %v1282_v7 = vsub.f32 %v2485_v4, %v2608_v3 }
 0x34d   : > { %v1351_v62 = vmul.f32 %v2546_v42, %v1329_v25  ;;  %1862 = vrsqrt.f32 %v1290_v36  ;;  %v1397_v24 = vrot.slane %v1847_v33, 4  ;;  %v1454_v36 = vmax.f32 %v1452_v60, %v1453_v57 }
 0x34e   : > { %v1849_v56 = vpop.eup %1848  ;;  %1864 = vtanh.f32 %v1370_v28  ;;  %v1298_v35 = vadd.f32 1e-05, %v1266_v58  ;;  %v1392_v47 = vmax.f32 %v1845_v26, %v1391_v29  ;;  %v1405_v28 = vrot.slane %v1404_v13, 2 }
 0x34f   : > { %v1319_v38 = vmul.f32 %v1849_v56, %v1271_v19  ;;  %v1851_v61 = vpop.eup %1850  ;;  %1866 = vtanh.f32 %v1365_v0  ;;  %v1373_v41 = vadd.f32 %v2558_v46, %v1351_v62  ;;  %v1398_v48 = vmax.f32 %v1847_v33, %v1397_v24 }
 0x350   : > { %1868 = vrsqrt.f32 %v1298_v35  ;;  %v1445_v43 = vrot.slane %v1851_v61, 4  ;;  %v1393_v27 = vrot.slane %v1392_v47, 2  ;;  %v1406_v49 = vmax.f32 %v1404_v13, %v1405_v28 }
 0x351   : > { %v1341_v63 = vmul.f32 %v2546_v42, %v1319_v38  ;;  %1870 = vtanh.f32 %v1373_v41  ;;  %v1399_v18 = vrot.slane %v1398_v48, 2 }
 0x352   : > { %v1853_v21 = vpop.eup %1852  ;;  %v1446_v2 = vmax.f32 %v1851_v61, %v1445_v43  ;;  %v1394_v26 = vmax.f32 %v1392_v47, %v1393_v27  ;;  %v1455_v61 = vrot.slane %v1454_v36, 1 }
 0x353   : > { %v1855_v6 = vpop.eup %1854  ;;  %v1327_v1 = vmul.f32 %v1853_v21, %v1279_v22  ;;  %v1363_v44 = vadd.f32 %v2558_v46, %v1341_v63  ;;  %v1400_v30 = vmax.f32 %v1398_v48, %v1399_v18 }
 0x354   : > { %v1320_v14 = vmul.f32 %v1855_v6, %v1272_v37  ;;  %v1857_v54 = vpop.eup %1856  ;;  %v1447_v62 = vrot.slane %v1446_v2, 2  ;;  %v1395_v24 = vrot.slane %v1394_v26, 1  ;;  %v1456_v47 = vmax.f32 %v1454_v36, %v1455_v61 }
 0x355   : > { %v1349_v10 = vmul.f32 %v2546_v42, %v1327_v1  ;;  %v1859_v51 = vpop.eup %1858  ;;  %1872 = vtanh.f32 %v1363_v44  ;;  %v1439_v17 = vrot.slane %v1857_v54, 4  ;;  %v1401_v22 = vrot.slane %v1400_v30, 1 }
 0x356   : > { %v1342_v53 = vmul.f32 %v2546_v42, %v1320_v14  ;;  %v1861_v32 = vpop.eup %1860  ;;  %v1409_v34 = vrot.slane %v1859_v51, 4  ;;  %v1448_v29 = vmax.f32 %v1446_v2, %v1447_v62  ;;  %v1407_v1 = vrot.slane %v1406_v49, 1 }
 0x357   : > { %v1371_v55 = vadd.f32 %v2558_v46, %v1349_v10  ;;  %v1863_v12 = vpop.eup %1862  ;;  %v1328_v15 = vmul.f32 %v1861_v32, %v1280_v9  ;;  %v1440_v8 = vmax.f32 %v1857_v54, %v1439_v17  ;;  %v1402_v14 = vmax.f32 %v1400_v30, %v1401_v22 }
 0x358   : > { %v1364_v20 = vadd.f32 %v2558_v46, %v1342_v53  ;;  %v1865_v40 = vpop.eup %1864  ;;  %v1322_v5 = vmul.f32 %v1863_v12, %v1274_v52  ;;  %v1410_v0 = vmax.f32 %v1859_v51, %v1409_v34  ;;  %v1396_v48 = vmax.f32 %v1394_v26, %v1395_v24 }
 0x359   : > { %1874 = vtanh.f32 %v1371_v55  ;;  %v1350_v59 = vmul.f32 %v2546_v42, %v1328_v15  ;;  %v1867_v11 = vpop.eup %1866  ;;  %v1457_v45 = vrot.slane %v1865_v40, 4  ;;  %v1441_v56 = vrot.slane %v1440_v8, 2 }
 0x35a   : > { %1876 = vtanh.f32 %v1364_v20  ;;  %v1344_v16 = vmul.f32 %v2546_v42, %v1322_v5  ;;  %v1869_v50 = vpop.eup %1868  ;;  %v1427_v3 = vrot.slane %v1867_v11, 4  ;;  %v1411_v41 = vrot.slane %v1410_v0, 2 }
 0x35b   : > { %v1372_v23 = vadd.f32 %v2558_v46, %v1350_v59  ;;  %v1330_v31 = vmul.f32 %v1869_v50, %v1282_v7  ;;  %v1871_v58 = vpop.eup %1870  ;;  %v1458_v19 = vmax.f32 %v1865_v40, %v1457_v45  ;;  %v1442_v60 = vmax.f32 %v1440_v8, %v1441_v56 }
 0x35c   : > { %v1366_v25 = vadd.f32 %v2558_v46, %v1344_v16  ;;  %v1428_v63 = vmax.f32 %v1867_v11, %v1427_v3  ;;  %v1412_v10 = vmax.f32 %v1410_v0, %v1411_v41  ;;  %v1449_v51 = vrot.slane %v1448_v29, 1 }
 0x35d   : > { %1878 = vtanh.f32 %v1372_v23  ;;  %v1352_v4 = vmul.f32 %v2546_v42, %v1330_v31  ;;  %v1475_v42 = vrot.slane %v1871_v58, 4  ;;  %v1459_v39 = vrot.slane %v1458_v19, 2 }
 0x35e   : > { %1880 = vtanh.f32 %v1366_v25  ;;  %v1429_v32 = vrot.slane %v1428_v63, 2  ;;  %v1408_v55 = vmax.f32 %v1406_v49, %v1407_v1  ;;  %v1443_v12 = vrot.slane %v1442_v60, 1 }
 0x35f   : > { %v1873_v33 = vpop.eup %1872  ;;  %v1374_v35 = vadd.f32 %v2558_v46, %v1352_v4  ;;  %v1476_v57 = vmax.f32 %v1871_v58, %v1475_v42  ;;  %v1460_v13 = vmax.f32 %v1458_v19, %v1459_v39  ;;  %v1504_v18 = vsel %vm1503_vm0, %v1402_v14, %v1396_v48 }
 0x360   : > { %v1415_v38 = vrot.slane %v1873_v33, 4  ;;  %v1413_v5 = vrot.slane %v1412_v10, 1  ;;  %v1450_v2 = vmax.f32 %v1448_v29, %v1449_v51  ;;  %v1430_v7 = vmax.f32 %v1428_v63, %v1429_v32 }
 0x361   : > { %1882 = vtanh.f32 %v1374_v35  ;;  %v1477_v50 = vrot.slane %v1476_v57, 2  ;;  %v1444_v45 = vmax.f32 %v1442_v60, %v1443_v12  ;;  %v1461_v8 = vrot.slane %v1460_v13, 1 }
 0x362   : > { %v1416_v37 = vmax.f32 %v1873_v33, %v1415_v38  ;;  %v1506_v23 = vsel %vm1505_vm1, %v1408_v55, %v1504_v18  ;;  %v1414_v0 = vmax.f32 %v1412_v10, %v1413_v5  ;;  %v1431_v33 = vrot.slane %v1430_v7, 1 }
 0x363   : > { %v1875_v21 = vpop.eup %1874  ;;  %v1517_v4 = vsel %vm1503_vm0, %v1450_v2, %v1444_v45  ;;  %v1478_v56 = vmax.f32 %v1476_v57, %v1477_v50 }
 0x364   : > { %v1877_v6 = vpop.eup %1876  ;;  %v1463_v44 = vrot.slane %v1875_v21, 4  ;;  %v1417_v54 = vrot.slane %v1416_v37, 2  ;;  %v1508_v22 = vsel %vm1507_vm2, %v1414_v0, %v1506_v23  ;;  %v1518_v24 = vsel %vm1505_vm1, %v1456_v47, %v1517_v4 }
 0x365   : > { %v1421_v46 = vrot.slane %v1877_v6, 4  ;;  %v1432_v42 = vmax.f32 %v1430_v7, %v1431_v33  ;;  %v1479_v60 = vrot.slane %v1478_v56, 1 }
 0x366   : > { %v1464_v43 = vmax.f32 %v1875_v21, %v1463_v44  ;;  %v1418_v9 = vmax.f32 %v1416_v37, %v1417_v54  ;;  %v1462_v21 = vmax.f32 %v1460_v13, %v1461_v8 }
 0x367   : > { %v1422_v53 = vmax.f32 %v1877_v6, %v1421_v46  ;;  %v1879_v52 = vpop.eup %1878  ;;  %v1480_v10 = vmax.f32 %v1478_v56, %v1479_v60 }
 0x368   : > { %v1465_v17 = vrot.slane %v1464_v43, 2  ;;  %v1881_v20 = vpop.eup %1880  ;;  %v1419_v15 = vrot.slane %v1418_v9, 1  ;;  %v1469_v27 = vrot.slane %v1879_v52, 4  ;;  %v1519_v44 = vsel %vm1507_vm2, %v1462_v21, %v1518_v24 }
 0x369   : > { %v1423_v40 = vrot.slane %v1422_v53, 2  ;;  %v1433_v34 = vrot.slane %v1881_v20, 4 }
 0x36a   : > { %v1466_v59 = vmax.f32 %v1464_v43, %v1465_v17  ;;  %v1470_v16 = vmax.f32 %v1879_v52, %v1469_v27  ;;  %v1420_v25 = vmax.f32 %v1418_v9, %v1419_v15 }
 0x36b   : > { %v1424_v11 = vmax.f32 %v1422_v53, %v1423_v40  ;;  %v1434_v28 = vmax.f32 %v1881_v20, %v1433_v34  ;;  %v1883_v30 = vpop.eup %1882 }
 0x36c   : > { %v1467_v36 = vrot.slane %v1466_v59, 1  ;;  %v1471_v26 = vrot.slane %v1470_v16, 2  ;;  %v1481_v58 = vrot.slane %v1883_v30, 4  ;;  %v1510_v29 = vsel %vm1509_vm3, %v1420_v25, %v1508_v22 }
 0x36d   : > { %v1425_v31 = vrot.slane %v1424_v11, 1  ;;  %v1435_v62 = vrot.slane %v1434_v28, 2 }
 0x36e   : > { %v1472_v19 = vmax.f32 %v1470_v16, %v1471_v26  ;;  %v1482_v35 = vmax.f32 %v1883_v30, %v1481_v58  ;;  %v1468_v38 = vmax.f32 %v1466_v59, %v1467_v36 }
 0x36f   : > { %v1426_v3 = vmax.f32 %v1424_v11, %v1425_v31  ;;  %v1436_v49 = vmax.f32 %v1434_v28, %v1435_v62 }
 0x370   : > { %v1473_v61 = vrot.slane %v1472_v19, 1  ;;  %v1483_v37 = vrot.slane %v1482_v35, 2  ;;  %v1520_v54 = vsel %vm1509_vm3, %v1468_v38, %v1519_v44 }
 0x371   : > { %v1437_v41 = vrot.slane %v1436_v49, 1  ;;  %v1512_v63 = vsel %vm1511_vm4, %v1426_v3, %v1510_v29 }
 0x372   : > { %v1474_v6 = vmax.f32 %v1472_v19, %v1473_v61  ;;  %v1484_v39 = vmax.f32 %v1482_v35, %v1483_v37  ;;  %v1514_v14 = vsel %vm1513_vm5, %v1432_v42, %v1512_v63 }
 0x373   : > { %v1438_v1 = vmax.f32 %v1436_v49, %v1437_v41 }
 0x374   : > { %v1485_v46 = vrot.slane %v1484_v39, 1  ;;  %v1521_v48 = vsel %vm1511_vm4, %v1474_v6, %v1520_v54 }
 0x375   : > { %v1516_v47 = vsel %vm1515_vm6, %v1438_v1, %v1514_v14  ;;  %v1522_v43 = vsel %vm1513_vm5, %v1480_v10, %v1521_v48 }
 0x376   : > { %1526 = vst [vmem:[%s326_s23] sm:$0xff] %v1516_v47  ;;  %v1486_v51 = vmax.f32 %v1484_v39, %v1485_v46 }
 0x378   : > { %v1523_v9 = vsel %vm1515_vm6, %v1486_v51, %v1522_v43 }
 0x379   : > { %1527 = vst [vmem:[%s326_s23 + $0x8] sm:$0xff] %v1523_v9 }
 0x37a   : > { %1897 = shalt.err (!%p1894_p3)
}
 0x37b   : > { %s1898_s17 = scalar_lea.hbm %s2667_s27, 256  ;;  %s1902_s23 = scalar_lea.hbm %s2725_s9, 512 }
 0x37c   : > { %p1899_p4 = scmp.ne.s32.totalorder %s2667_s27, %s1898_s17  ;;  %p1903_p9 = scmp.lt.u32.totalorder %s2667_s27, %s2725_s9 }
 0x37d   : > { %p1904_p10 = scmp.lt.u32.totalorder %s1902_s23, %s1898_s17  ;;  %p1906_p12 = scmp.lt.u32.totalorder %s1898_s17, %s2667_s27 }
 0x37e   : > { %p1900_p7 = pnand %p1899_p4, %p2042_p5 }
 0x37f   : > { %p1905_p11 = por %p1904_p10, %p1903_p9 }
 0x380   : > { %p1901_p8 = pneg %p1900_p7 }
 0x381   : > { %p1907_p13 = por %p1906_p12, %p1905_p11 }
 0x383   : > { %p1908_p0 = pnand %p1907_p13, %p1901_p8 }
 0x385   : > { %1911 = shalt.err (!%p1908_p0)
}
 0x386   : > { %s1952_s28 = smov 128   ;;  %s1953_s29 = smov 8  }
 0x387   : > { %1695 = dma.vmem_to_hbm [thread:$0]  (%p2042_p5), %s2669_s24, 256, %s2667_s27, %s2675_s13, %s1952_s28, %s1952_s28, %s1953_s29  }
 0x388 PF: > { %p1701_p1 = scmp.ge.s32.totalorder %s1946_s12, 2  ;;  %s1557_s14 = sand.u32 1, %s1934_s30  }
 0x389   : > { %s1558_s16 = scalar_lea.sflag [#allocation3], %s1557_s14 }
 0x38a   : > { %p1698_p2 = pnand %p1701_p1, %p2046_p6 }
 0x38c   : > { %1929 = dma.done.wait (!%p1698_p2), %s1558_s16, 256  }
 0x38d   : > { %1931 = vsyncadd (!%p1698_p2), %s1558_s16, 4294967040  ;;  %p19_p3 = scmp.ge.s32.totalorder %s2029_s15, 4   ;;  %s2728_s30 = smov %s1938_s10 }
 0x38e   : > { %s2729_s10 = smov %s1942_s11  ;;  %s2730_s11 = smov %s2040_s18 }
 0x38f   : > { %s2731_s12 = smov %s2029_s15  ;;  %21 = sbr.rel (!%p19_p3) target bundleno = 3 (0x3), region = 91 }
 0x396   :  { %1563 = vsyncpa [#allocation3], 1 }
 0x397   :  { %1565 = vsyncpa [#allocation3 + $0x1], 1 }

</bundles_post_ra>
